<compile_context>
chip_gen: v5e
topology: v5e:2x2
jax: 0.10.0
libtpu: 0.0.40
codegen_flags: <defaults>
</compile_context>

<pallas_src>
import numpy as np
import jax
import jax.numpy as jnp
from jax.experimental import pallas as pl
from jax.experimental.pallas import tpu as pltpu

SAMPLE_RATE = 16000
N_FFT = 512
WIN_LENGTH = 400
HOP_LENGTH = 160
N_MELS = 80
COEF = 0.97
F_MIN = 20.0
F_MAX = 7600.0
EPS = 1e-6

N_FREQS = N_FFT // 2 + 1          # 257
NF_PAD = 384                      # 257 zero-padded to 3*128 (lane aligned)
N_MELS_PAD = 128                  # 80 zero-padded to 128 (lane-dense output)
TF_MAX = 1024                     # frame-tile size (rows of the MXU matmuls)


def _round_up(x, m):
    return (x + m - 1) // m * m


# ---------------------------------------------------------------------------
# Deterministic parameter construction (matches torchaudio MelSpectrogram with
# window_fn=torch.hamming_window, f_min=20, f_max=7600, power=2, center=True,
# pad_mode='reflect', norm=None, mel_scale='htk').  The Hamming window is
# folded into the real-DFT weights; everything is zero-padded lane-aligned.
# DFT weights are emitted in bf16 (MXU-native); the mel filterbank stays f32.
# ---------------------------------------------------------------------------
def _build_weights():
    # Periodic Hamming window, centered zero-pad to n_fft (as torch.stft does).
    n = np.arange(WIN_LENGTH, dtype=np.float64)
    win = 0.54 - 0.46 * np.cos(2.0 * np.pi * n / WIN_LENGTH)
    lp = (N_FFT - WIN_LENGTH) // 2
    win = np.pad(win, (lp, N_FFT - WIN_LENGTH - lp))              # (N_FFT,)

    # Real-DFT matrices with the window folded in, fused as [cos | sin].
    t = np.arange(N_FFT, dtype=np.float64)[:, None]
    f = np.arange(N_FREQS, dtype=np.float64)[None, :]
    ang = 2.0 * np.pi * t * f / N_FFT
    cos_w = win[:, None] * np.cos(ang)                            # (N_FFT, N_FREQS)
    sin_w = win[:, None] * np.sin(ang)

    dftw = np.zeros((N_FFT, 2 * NF_PAD), dtype=np.float64)
    dftw[:, :N_FREQS] = cos_w
    dftw[:, NF_PAD:NF_PAD + N_FREQS] = sin_w

    # HTK mel filterbank, norm=None (torchaudio.functional.melscale_fbanks).
    all_freqs = np.linspace(0.0, SAMPLE_RATE // 2, N_FREQS)

    def hz_to_mel(hz):
        return 2595.0 * np.log10(1.0 + hz / 700.0)

    def mel_to_hz(m):
        return 700.0 * (10.0 ** (m / 2595.0) - 1.0)

    m_pts = np.linspace(hz_to_mel(F_MIN), hz_to_mel(F_MAX), N_MELS + 2)
    f_pts = mel_to_hz(m_pts)
    f_diff = f_pts[1:] - f_pts[:-1]                               # (n_mels+1,)
    slopes = f_pts[None, :] - all_freqs[:, None]                  # (n_freqs, n_mels+2)
    down = (-slopes[:, :-2]) / f_diff[:-1]
    up = slopes[:, 2:] / f_diff[1:]
    fb = np.maximum(0.0, np.minimum(down, up))                    # (N_FREQS, N_MELS)

    fb_pad = np.zeros((NF_PAD, N_MELS_PAD), dtype=np.float64)
    fb_pad[:N_FREQS, :N_MELS] = fb

    # bf16 DFT weight (MXU-native), f32 mel filterbank (second matmul is ~10%
    # of FLOPs; kept f32 alongside the f32 power stage per review).
    return jnp.asarray(dftw, jnp.bfloat16), jnp.asarray(fb_pad, jnp.float32)


# ---------------------------------------------------------------------------
# Pallas kernel: one (batch, frame-tile) block per grid step.
# ---------------------------------------------------------------------------
def mel_kernel(frames_ref, dftw_ref, fb_ref, out_ref):
    x = frames_ref[0]                                             # (TF, 512) bf16

    # Fused, window-folded real DFT: one bf16 MXU matmul, f32 accumulation.
    spec = jnp.dot(x, dftw_ref[...],
                   preferred_element_type=jnp.float32)            # (TF, 768) f32
    re = spec[:, :NF_PAD]
    im = spec[:, NF_PAD:]
    power = re * re + im * im                                     # f32 (VPU)

    # Mel projection (f32; padded freq cols are zero, padded mel cols -> log eps).
    mel = jnp.dot(power, fb_ref[...],
                  preferred_element_type=jnp.float32)             # (TF, 128) f32
    out_ref[0] = jnp.log(mel + EPS)


# ---------------------------------------------------------------------------
# Wrapper: pre-emphasis + framing glue, then pallas_call, then mean-centering.
# ---------------------------------------------------------------------------
def mel_spectrogram(x, tile_frames=TF_MAX):
    """x: (batch, time) float32 -> (batch, n_mels, num_frames) float32."""
    B, T = x.shape
    x = x.astype(jnp.float32)

    # PreEmphasis (f32): reflect-pad 1 on the left, y[t] = x[t] - coef * x[t-1].
    xp = jnp.concatenate([x[:, 1:2], x], axis=1)
    pre = xp[:, 1:] - COEF * xp[:, :-1]                           # (B, T)

    # STFT framing (center=True, reflect pad n_fft//2 on both sides).
    pad = N_FFT // 2
    padded = jnp.pad(pre, ((0, 0), (pad, pad)), mode="reflect")
    num_frames = 1 + (padded.shape[1] - N_FFT) // HOP_LENGTH

    # Cast to bf16 BEFORE the gather so the materialized frames tensor (and the
    # kernel's input DMA stream) is half the bytes.
    padded_bf16 = padded.astype(jnp.bfloat16)
    idx = jnp.arange(num_frames)[:, None] * HOP_LENGTH + jnp.arange(N_FFT)[None, :]
    frames = padded_bf16[:, idx]                                  # (B, F, N_FFT) bf16

    # Frame-axis tiling: multiples of 16 (bf16 sublane packing).  Zero-padded
    # frames produce finite log(eps) rows that are sliced away below.
    tf = min(tile_frames, _round_up(num_frames, 16))
    # v7x has 2 TensorCores: make sure single-example inputs still produce at
    # least two grid steps so both cores get work.
    if B == 1 and num_frames > 64 and _round_up(num_frames, tf) // tf < 2:
        tf = _round_up((num_frames + 1) // 2, 16)
    f_pad = _round_up(num_frames, tf)
    if f_pad != num_frames:
        frames = jnp.pad(frames, ((0, 0), (0, f_pad - num_frames), (0, 0)))

    dftw, fb = _build_weights()

    out = pl.pallas_call(
        mel_kernel,
        out_shape=jax.ShapeDtypeStruct((B, f_pad, N_MELS_PAD), jnp.float32),
        grid_spec=pltpu.PrefetchScalarGridSpec(
            num_scalar_prefetch=0,
            grid=(B, f_pad // tf),
            in_specs=[
                pl.BlockSpec((1, tf, N_FFT), lambda b, t: (b, t, 0)),
                # Grid-invariant weights (constant index_map -> fetched once,
                # no per-step re-DMA).
                pl.BlockSpec((N_FFT, 2 * NF_PAD), lambda b, t: (0, 0)),
                pl.BlockSpec((NF_PAD, N_MELS_PAD), lambda b, t: (0, 0)),
            ],
            out_specs=pl.BlockSpec((1, tf, N_MELS_PAD), lambda b, t: (b, t, 0)),
        ),
        compiler_params=pltpu.CompilerParams(
            dimension_semantics=("parallel", "parallel"),
            vmem_limit_bytes=32 * 1024 * 1024,
        ),
    )(frames, dftw, fb)

    # (B, F_pad, 128) -> drop padding -> (B, n_mels, time), then per-mel
    # mean-centering over time (matches x - mean(x, dim=-1) in PyTorch).
    logmel = out[:, :num_frames, :N_MELS]
    logmel = jnp.transpose(logmel, (0, 2, 1))                     # (B, 80, F)
    return logmel - jnp.mean(logmel, axis=-1, keepdims=True)


if __name__ == "__main__":
    key = jax.random.PRNGKey(0)
    # small but valid: 0.1 s of 16 kHz audio per example
    x = jax.random.normal(key, (2, 1600), dtype=jnp.float32)
    y = jax.jit(mel_spectrogram)(x)
    jax.block_until_ready(y)
    assert y.shape == (2, N_MELS, 1 + 1600 // HOP_LENGTH), y.shape
    print("KERNEL_OK")
</pallas_src>

<mosaic_0001>
module attributes {stable_mosaic.version = 11 : i64} {
  func.func @mel_kernel(%arg0: i32, %arg1: i32, %arg2: memref<1x16x512xbf16, #tpu.memory_space<vmem>>, %arg3: memref<512x768xbf16, #tpu.memory_space<vmem>>, %arg4: memref<384x128xf32, #tpu.memory_space<vmem>>, %arg5: memref<1x16x128xf32, #tpu.memory_space<vmem>>) attributes {dimension_semantics = [#tpu.dimension_semantics<parallel>, #tpu.dimension_semantics<parallel>], iteration_bounds = array<i64: 2, 1>, scalar_prefetch = 0 : i64, scratch_operands = 0 : i64, tpu.core_type = #tpu.core_type<tc>, window_params = [{transform_indices = @transform_0, window_bounds = array<i64: 1, 16, 512>}, {pipeline_mode = #tpu.pipeline_mode<synchronous>, transform_indices = @transform_1, window_bounds = array<i64: 512, 768>}, {pipeline_mode = #tpu.pipeline_mode<synchronous>, transform_indices = @transform_2, window_bounds = array<i64: 384, 128>}, {transform_indices = @transform_3, window_bounds = array<i64: 1, 16, 128>}]} {
    %c0 = arith.constant 0 : index
    %c0_0 = arith.constant 0 : index
    %c0_1 = arith.constant 0 : index
    %0 = vector.load %arg2[%c0, %c0_0, %c0_1] : memref<1x16x512xbf16, #tpu.memory_space<vmem>>, vector<1x16x512xbf16>
    %1 = vector.shape_cast %0 : vector<1x16x512xbf16> to vector<16x512xbf16>
    %c0_2 = arith.constant 0 : index
    %c0_3 = arith.constant 0 : index
    %2 = vector.load %arg3[%c0_2, %c0_3] : memref<512x768xbf16, #tpu.memory_space<vmem>>, vector<512x768xbf16>
    %cst = arith.constant dense<0.000000e+00> : vector<16x768xf32>
    %3 = tpu.matmul %1, %2, %cst {dimension_numbers = #tpu.dot_dimension_numbers<[1], [0], [0], [1], [0, 0, 1, 1], [], []>} : vector<16x512xbf16>, vector<512x768xbf16>, vector<16x768xf32> -> vector<16x768xf32>
    %4 = vector.extract_strided_slice %3 {offsets = [0, 0], sizes = [16, 384], strides = [1, 1]} : vector<16x768xf32> to vector<16x384xf32>
    %5 = vector.extract_strided_slice %3 {offsets = [0, 384], sizes = [16, 384], strides = [1, 1]} : vector<16x768xf32> to vector<16x384xf32>
    %6 = arith.mulf %4, %4 : vector<16x384xf32>
    %7 = arith.mulf %5, %5 : vector<16x384xf32>
    %8 = arith.addf %6, %7 : vector<16x384xf32>
    %c0_4 = arith.constant 0 : index
    %c0_5 = arith.constant 0 : index
    %9 = vector.load %arg4[%c0_4, %c0_5] : memref<384x128xf32, #tpu.memory_space<vmem>>, vector<384x128xf32>
    %cst_6 = arith.constant dense<0.000000e+00> : vector<16x128xf32>
    %10 = tpu.matmul %8, %9, %cst_6 {dimension_numbers = #tpu.dot_dimension_numbers<[1], [0], [0], [1], [0, 0, 1, 1], [], []>} : vector<16x384xf32>, vector<384x128xf32>, vector<16x128xf32> -> vector<16x128xf32>
    %cst_7 = arith.constant 9.99999997E-7 : f32
    %11 = vector.broadcast %cst_7 : f32 to vector<16x128xf32>
    %12 = arith.addf %10, %11 : vector<16x128xf32>
    %13 = math.log %12 : vector<16x128xf32>
    %c0_8 = arith.constant 0 : index
    %c0_9 = arith.constant 0 : index
    %c0_10 = arith.constant 0 : index
    %14 = vector.load %arg5[%c0_8, %c0_9, %c0_10] : memref<1x16x128xf32, #tpu.memory_space<vmem>>, vector<1x16x128xf32>
    %15 = vector.shape_cast %14 : vector<1x16x128xf32> to vector<16x128xf32>
    %16 = vector.shape_cast %13 : vector<16x128xf32> to vector<1x16x128xf32>
    tpu.vector_store %arg5[%c0_8, %c0_9, %c0_10], %16 {strides = array<i32>} : memref<1x16x128xf32, #tpu.memory_space<vmem>>, vector<1x16x128xf32>,
    return
  }
  func.func @transform_0(%arg0: i32, %arg1: i32) -> (i32, i32, i32) {
    %c0_i32 = arith.constant 0 : i32
    %c0_i32_0 = arith.constant 0 : i32
    return %arg0, %arg1, %c0_i32 : i32, i32, i32
  }
  func.func @transform_1(%arg0: i32, %arg1: i32) -> (i32, i32) {
    %c0_i32 = arith.constant 0 : i32
    %c0_i32_0 = arith.constant 0 : i32
    %c0_i32_1 = arith.constant 0 : i32
    return %c0_i32, %c0_i32_0 : i32, i32
  }
  func.func @transform_2(%arg0: i32, %arg1: i32) -> (i32, i32) {
    %c0_i32 = arith.constant 0 : i32
    %c0_i32_0 = arith.constant 0 : i32
    %c0_i32_1 = arith.constant 0 : i32
    return %c0_i32, %c0_i32_0 : i32, i32
  }
  func.func @transform_3(%arg0: i32, %arg1: i32) -> (i32, i32, i32) {
    %c0_i32 = arith.constant 0 : i32
    %c0_i32_0 = arith.constant 0 : i32
    return %arg0, %arg1, %c0_i32 : i32, i32, i32
  }
}

</mosaic_0001>

<bundles_post_ra>
// kernel: mel_spectrogram.1
= control target key start
LH: loop header
LB: loop body
LE: loop exit
PB: predicated region body
PF: predicated region fallthrough
CT: control target
= control target key end

     0   :  { %s3037_s12 = smov 0   ;;  %s3039_s13 = smov 0   ;;  %s4462_s0 = inlined_call_operand.vmem [shape: bf16[2,16,512], index: 0, kind: input, shape index: {}]   ;;  %s4463_s1 = inlined_call_operand.vmem [shape: bf16[512,768], index: 1, kind: input, shape index: {}]   ;;  %s4464_s2 = inlined_call_operand.vmem [shape: f32[384,128], index: 2, kind: input, shape index: {}]   ;;  %s4465_s3 = inlined_call_operand.vmem [shape: f32[2,16,128], index: 3, kind: output, shape index: {}]  }
   0x1   :  { %s3041_s14 = smov 0  }
   0x2 LB: > { %s25_s15 = sadd.s32 1, %s3011_s13  ;;  %p1960_p0 = scmp.ge.s32.totalorder %s3015_s14, 1  ;;  %s3015_s14 = sphi %s3041_s14, %s13_s14   ;;  %s3011_s13 = sphi %s3039_s13, %s4467_s13   ;;  %s3007_s12 = sphi %s3037_s12, %s4466_s12  }
   0x3   : > { %p27_p1 = scmp.ge.s32.totalorder %s25_s15, 2  ;;  %p159_p2 = scmp.lt.s32.totalorder %s3015_s14, 3 }
   0x5   : > { %s4469_s15 = smov (%p27_p1, %s25_s15), 0  ;;  %p160_p3 = pnand %p1960_p0, %p159_p2 }
   0x6   : > { %p193_p4 = scmp.lt.s32.totalorder (!%p160_p3), %s3007_s12, 1 }
   0x7   : > { %163 = sbr.rel (%p160_p3) target bundleno = 500 (0x1f4), region = 32 }
   0xc   : > { %v2151_v0 = vld [vmem:[%s4463_s1 + $0x150] sm:$0xf]  ;;  %v2802_v1 = vld [vmem:[%s4463_s1 + $0x164] sm:$0xf0]  ;;  %v2127_v11 = vld [vmem:[%s4463_s1 + $0x120] sm:$0xf] }
   0xd   : > { %v2343_v2 = vld [vmem:[%s4463_s1 + $0x2d0] sm:$0xf]  ;;  %v2152_v3 = vor.u32 %v2802_v1, %v2151_v0  ;;  %v2850_v4 = vld [vmem:[%s4463_s1 + $0x2e4] sm:$0xf0]  ;;  %v2796_v13 = vld [vmem:[%s4463_s1 + $0x134] sm:$0xf0] }
   0xe   : > { %v2535_v5 = vld [vmem:[%s4463_s1 + $0x450] sm:$0xf]  ;;  %v2898_v6 = vld [vmem:[%s4463_s1 + $0x464] sm:$0xf0]  ;;  %v2344_v7 = vor.u32 %v2850_v4, %v2343_v2  ;;  %v2319_v14 = vld [vmem:[%s4463_s1 + $0x2a0] sm:$0xf]  ;;  %v2128_v16 = vor.u32 %v2796_v13, %v2127_v11 }
   0xf   : > { %v2536_v8 = vor.u32 %v2898_v6, %v2535_v5  ;;  %v2727_v9 = vld [vmem:[%s4463_s1 + $0x5d0] sm:$0xf]  ;;  %v2946_v10 = vld [vmem:[%s4463_s1 + $0x5e4] sm:$0xf0]  ;;  %1389 = vmatpush.bf16.msra.mxu0 %v2152_v3  ;;  %v2844_v15 = vld [vmem:[%s4463_s1 + $0x2b4] sm:$0xf0] }
  0x10   : > { %v2728_v12 = vor.u32 %v2946_v10, %v2727_v9  ;;  %1403 = vmatpush.bf16.msra.mxu1 %v2344_v7  ;;  %v2320_v17 = vor.u32 %v2844_v15, %v2319_v14  ;;  %v2511_v18 = vld [vmem:[%s4463_s1 + $0x420] sm:$0xf]  ;;  %v2892_v19 = vld [vmem:[%s4463_s1 + $0x434] sm:$0xf0]  ;;  %v2103_v23 = vld [vmem:[%s4463_s1 + $0xf0] sm:$0xf] }
  0x11   : > { %1417 = vmatpush.bf16.msra.mxu2 %v2536_v8  ;;  %v2703_v20 = vld [vmem:[%s4463_s1 + $0x5a0] sm:$0xf]  ;;  %v2512_v21 = vor.u32 %v2892_v19, %v2511_v18  ;;  %v2940_v22 = vld [vmem:[%s4463_s1 + $0x5b4] sm:$0xf0]  ;;  %v2790_v24 = vld [vmem:[%s4463_s1 + $0x104] sm:$0xf0] }
  0x12   : > { %1431 = vmatpush.bf16.msra.mxu3 %v2728_v12  ;;  %v2704_v25 = vor.u32 %v2940_v22, %v2703_v20  ;;  %v2295_v26 = vld [vmem:[%s4463_s1 + $0x270] sm:$0xf]  ;;  %v2838_v27 = vld [vmem:[%s4463_s1 + $0x284] sm:$0xf0]  ;;  %v2104_v29 = vor.u32 %v2790_v24, %v2103_v23  ;;  %v2079_v35 = vld [vmem:[%s4463_s1 + $0xc0] sm:$0xf] }
  0x13   : > { %v2487_v28 = vld [vmem:[%s4463_s1 + $0x3f0] sm:$0xf]  ;;  %1390 = vmatpush.bf16.msra.mxu0 %v2128_v16  ;;  %v2886_v30 = vld [vmem:[%s4463_s1 + $0x404] sm:$0xf0]  ;;  %v2296_v33 = vor.u32 %v2838_v27, %v2295_v26  ;;  %v2784_v36 = vld [vmem:[%s4463_s1 + $0xd4] sm:$0xf0] }
  0x14   : > { %v2679_v31 = vld [vmem:[%s4463_s1 + $0x570] sm:$0xf]  ;;  %v2934_v32 = vld [vmem:[%s4463_s1 + $0x584] sm:$0xf0]  ;;  %1404 = vmatpush.bf16.msra.mxu1 %v2320_v17  ;;  %v2488_v34 = vor.u32 %v2886_v30, %v2487_v28  ;;  %v2271_v37 = vld [vmem:[%s4463_s1 + $0x240] sm:$0xf]  ;;  %v2080_v44 = vor.u32 %v2784_v36, %v2079_v35 }
  0x15   : > { %1418 = vmatpush.bf16.msra.mxu2 %v2512_v21  ;;  %v2680_v38 = vor.u32 %v2934_v32, %v2679_v31  ;;  %v2832_v39 = vld [vmem:[%s4463_s1 + $0x254] sm:$0xf0]  ;;  %v2463_v40 = vld [vmem:[%s4463_s1 + $0x3c0] sm:$0xf]  ;;  %v2055_v47 = vld [vmem:[%s4463_s1 + $0x90] sm:$0xf] }
  0x16   : > { %1432 = vmatpush.bf16.msra.mxu3 %v2704_v25  ;;  %v2880_v41 = vld [vmem:[%s4463_s1 + $0x3d4] sm:$0xf0]  ;;  %v2655_v42 = vld [vmem:[%s4463_s1 + $0x540] sm:$0xf]  ;;  %v2272_v45 = vor.u32 %v2832_v39, %v2271_v37  ;;  %v2778_v48 = vld [vmem:[%s4463_s1 + $0xa4] sm:$0xf0] }
  0x17   : > { %v2928_v43 = vld [vmem:[%s4463_s1 + $0x554] sm:$0xf0]  ;;  %1391 = vmatpush.bf16.msra.mxu0 %v2104_v29  ;;  %v2464_v46 = vor.u32 %v2880_v41, %v2463_v40  ;;  %v2247_v49 = vld [vmem:[%s4463_s1 + $0x210] sm:$0xf]  ;;  %v2826_v51 = vld [vmem:[%s4463_s1 + $0x224] sm:$0xf0]  ;;  %v2056_v56 = vor.u32 %v2778_v48, %v2055_v47 }
  0x18   : > { %1405 = vmatpush.bf16.msra.mxu1 %v2296_v33  ;;  %v2656_v50 = vor.u32 %v2928_v43, %v2655_v42  ;;  %v2439_v52 = vld [vmem:[%s4463_s1 + $0x390] sm:$0xf]  ;;  %v2874_v53 = vld [vmem:[%s4463_s1 + $0x3a4] sm:$0xf0]  ;;  %v2248_v57 = vor.u32 %v2826_v51, %v2247_v49  ;;  %v2031_v59 = vld [vmem:[%s4463_s1 + $0x60] sm:$0xf] }
  0x19   : > { %1419 = vmatpush.bf16.msra.mxu2 %v2488_v34  ;;  %v2631_v54 = vld [vmem:[%s4463_s1 + $0x510] sm:$0xf]  ;;  %v2922_v55 = vld [vmem:[%s4463_s1 + $0x524] sm:$0xf0]  ;;  %v2440_v58 = vor.u32 %v2874_v53, %v2439_v52  ;;  %v2772_v60 = vld [vmem:[%s4463_s1 + $0x74] sm:$0xf0] }
  0x1a   : > { %1433 = vmatpush.bf16.msra.mxu3 %v2680_v38  ;;  %v2223_v61 = vld [vmem:[%s4463_s1 + $0x1e0] sm:$0xf]  ;;  %v2632_v62 = vor.u32 %v2922_v55, %v2631_v54  ;;  %v2820_v63 = vld [vmem:[%s4463_s1 + $0x1f4] sm:$0xf0]  ;;  %v2032_v4 = vor.u32 %v2772_v60, %v2031_v59  ;;  %v2007_v7 = vld [vmem:[%s4463_s1 + $0x30] sm:$0xf] }
  0x1b   : > { %1392 = vmatpush.bf16.msra.mxu0 %v2080_v44  ;;  %v2415_v0 = vld [vmem:[%s4463_s1 + $0x360] sm:$0xf]  ;;  %v2868_v1 = vld [vmem:[%s4463_s1 + $0x374] sm:$0xf0]  ;;  %v2224_v5 = vor.u32 %v2820_v63, %v2223_v61  ;;  %v2766_v8 = vld [vmem:[%s4463_s1 + $0x44] sm:$0xf0] }
  0x1c   : > { %1406 = vmatpush.bf16.msra.mxu1 %v2272_v45  ;;  %v2607_v2 = vld [vmem:[%s4463_s1 + $0x4e0] sm:$0xf]  ;;  %v2916_v3 = vld [vmem:[%s4463_s1 + $0x4f4] sm:$0xf0]  ;;  %v2416_v6 = vor.u32 %v2868_v1, %v2415_v0  ;;  %v2199_v9 = vld [vmem:[%s4463_s1 + $0x1b0] sm:$0xf]  ;;  %v2008_v16 = vor.u32 %v2766_v8, %v2007_v7 }
  0x1d   : > { %1420 = vmatpush.bf16.msra.mxu2 %v2464_v46  ;;  %v2608_v10 = vor.u32 %v2916_v3, %v2607_v2  ;;  %v2814_v11 = vld [vmem:[%s4463_s1 + $0x1c4] sm:$0xf0]  ;;  %v2391_v12 = vld [vmem:[%s4463_s1 + $0x330] sm:$0xf]  ;;  %v1983_v17 = vld [vmem:[%s4463_s1] sm:$0xf] }
  0x1e   : > { %1434 = vmatpush.bf16.msra.mxu3 %v2656_v50  ;;  %v2862_v13 = vld [vmem:[%s4463_s1 + $0x344] sm:$0xf0]  ;;  %v2583_v14 = vld [vmem:[%s4463_s1 + $0x4b0] sm:$0xf]  ;;  %v2760_v18 = vld [vmem:[%s4463_s1 + $0x14] sm:$0xf0]  ;;  %v2200_v19 = vor.u32 %v2814_v11, %v2199_v9 }
  0x1f   : > { %1393 = vmatpush.bf16.msra.mxu0 %v2056_v56  ;;  %v2910_v15 = vld [vmem:[%s4463_s1 + $0x4c4] sm:$0xf0]  ;;  %v2392_v20 = vor.u32 %v2862_v13, %v2391_v12  ;;  %v2175_v21 = vld [vmem:[%s4463_s1 + $0x180] sm:$0xf]  ;;  %v2808_v22 = vld [vmem:[%s4463_s1 + $0x194] sm:$0xf0]  ;;  %v1984_v31 = vor.u32 %v2760_v18, %v1983_v17 }
  0x20   : > { %1407 = vmatpush.bf16.msra.mxu1 %v2248_v57  ;;  %v2367_v23 = vld [vmem:[%s4463_s1 + $0x300] sm:$0xf]  ;;  %v2584_v24 = vor.u32 %v2910_v15, %v2583_v14  ;;  %v2856_v25 = vld [vmem:[%s4463_s1 + $0x314] sm:$0xf0]  ;;  %v2799_v28 = vld [vmem:[%s4463_s1 + $0x154] sm:$0xf]  ;;  %v2176_v35 = vor.u32 %v2808_v22, %v2175_v21 }
  0x21   : > { %1421 = vmatpush.bf16.msra.mxu2 %v2440_v58  ;;  %v2559_v26 = vld [vmem:[%s4463_s1 + $0x480] sm:$0xf]  ;;  %v2904_v27 = vld [vmem:[%s4463_s1 + $0x494] sm:$0xf0]  ;;  %v2153_v29 = vld [vmem:[%s4463_s1 + $0x168] sm:$0xf0]  ;;  %v2368_v36 = vor.u32 %v2856_v25, %v2367_v23 }
  0x22   : > { %1435 = vmatpush.bf16.msra.mxu3 %v2632_v62  ;;  %v2847_v30 = vld [vmem:[%s4463_s1 + $0x2d4] sm:$0xf]  ;;  %v2345_v32 = vld [vmem:[%s4463_s1 + $0x2e8] sm:$0xf0]  ;;  %v2560_v39 = vor.u32 %v2904_v27, %v2559_v26  ;;  %v2156_v40 = vor.u32 %v2799_v28, %v2153_v29  ;;  %v2793_v43 = vld [vmem:[%s4463_s1 + $0x124] sm:$0xf] }
  0x23   : > { %1394 = vmatpush.bf16.msra.mxu0 %v2032_v4  ;;  %v2895_v33 = vld [vmem:[%s4463_s1 + $0x454] sm:$0xf]  ;;  %v2537_v34 = vld [vmem:[%s4463_s1 + $0x468] sm:$0xf0]  ;;  %v2348_v41 = vor.u32 %v2847_v30, %v2345_v32  ;;  %v2129_v44 = vld [vmem:[%s4463_s1 + $0x138] sm:$0xf0] }
  0x24   : > { %1408 = vmatpush.bf16.msra.mxu1 %v2224_v5  ;;  %v2943_v37 = vld [vmem:[%s4463_s1 + $0x5d4] sm:$0xf]  ;;  %v2729_v38 = vld [vmem:[%s4463_s1 + $0x5e8] sm:$0xf0]  ;;  %v2540_v42 = vor.u32 %v2895_v33, %v2537_v34  ;;  %v2841_v45 = vld [vmem:[%s4463_s1 + $0x2a4] sm:$0xf]  ;;  %v2132_v52 = vor.u32 %v2793_v43, %v2129_v44 }
  0x25   : > { %1422 = vmatpush.bf16.msra.mxu2 %v2416_v6  ;;  %v2732_v46 = vor.u32 %v2943_v37, %v2729_v38  ;;  %v2321_v47 = vld [vmem:[%s4463_s1 + $0x2b8] sm:$0xf0]  ;;  %v2889_v48 = vld [vmem:[%s4463_s1 + $0x424] sm:$0xf]  ;;  %v2787_v55 = vld [vmem:[%s4463_s1 + $0xf4] sm:$0xf] }
  0x26   : > { %1436 = vmatpush.bf16.msra.mxu3 %v2608_v10  ;;  %v2513_v49 = vld [vmem:[%s4463_s1 + $0x438] sm:$0xf0]  ;;  %v2937_v50 = vld [vmem:[%s4463_s1 + $0x5a4] sm:$0xf]  ;;  %v2324_v53 = vor.u32 %v2841_v45, %v2321_v47  ;;  %v2105_v56 = vld [vmem:[%s4463_s1 + $0x108] sm:$0xf0] }
  0x27   : > { %1395 = vmatpush.bf16.msra.mxu0 %v2008_v16  ;;  %v2705_v51 = vld [vmem:[%s4463_s1 + $0x5b8] sm:$0xf0]  ;;  %v2516_v54 = vor.u32 %v2889_v48, %v2513_v49  ;;  %v2835_v57 = vld [vmem:[%s4463_s1 + $0x274] sm:$0xf]  ;;  %v2297_v59 = vld [vmem:[%s4463_s1 + $0x288] sm:$0xf0]  ;;  %v2108_v0 = vor.u32 %v2787_v55, %v2105_v56 }
  0x28   : > { %1409 = vmatpush.bf16.msra.mxu1 %v2200_v19  ;;  %v2708_v58 = vor.u32 %v2937_v50, %v2705_v51  ;;  %v2883_v60 = vld [vmem:[%s4463_s1 + $0x3f4] sm:$0xf]  ;;  %v2489_v61 = vld [vmem:[%s4463_s1 + $0x408] sm:$0xf0]  ;;  %v2781_v1 = vld [vmem:[%s4463_s1 + $0xc4] sm:$0xf]  ;;  %v2300_v3 = vor.u32 %v2835_v57, %v2297_v59 }
  0x29   : > { %1423 = vmatpush.bf16.msra.mxu2 %v2392_v20  ;;  %v2931_v62 = vld [vmem:[%s4463_s1 + $0x574] sm:$0xf]  ;;  %v2681_v63 = vld [vmem:[%s4463_s1 + $0x588] sm:$0xf0]  ;;  %v2081_v2 = vld [vmem:[%s4463_s1 + $0xd8] sm:$0xf0]  ;;  %v2492_v4 = vor.u32 %v2883_v60, %v2489_v61 }
  0x2a   : > { %1437 = vmatpush.bf16.msra.mxu3 %v2584_v24  ;;  %v2829_v5 = vld [vmem:[%s4463_s1 + $0x244] sm:$0xf]  ;;  %v2273_v6 = vld [vmem:[%s4463_s1 + $0x258] sm:$0xf0]  ;;  %v2684_v8 = vor.u32 %v2931_v62, %v2681_v63  ;;  %s4471_s12 = smov (!%p193_p4, %s3007_s12), 1  ;;  %v2084_v14 = vor.u32 %v2781_v1, %v2081_v2 }
  0x2b   : > { %1396 = vmatpush.bf16.msra.mxu0 %v1984_v31  ;;  %v2877_v7 = vld [vmem:[%s4463_s1 + $0x3c4] sm:$0xf]  ;;  %v2465_v9 = vld [vmem:[%s4463_s1 + $0x3d8] sm:$0xf0]  ;;  %v2775_v12 = vld [vmem:[%s4463_s1 + $0x94] sm:$0xf]  ;;  %v2276_v18 = vor.u32 %v2829_v5, %v2273_v6 }
  0x2c   : > { %1410 = vmatpush.bf16.msra.mxu1 %v2176_v35  ;;  %v2925_v10 = vld [vmem:[%s4463_s1 + $0x544] sm:$0xf]  ;;  %v2657_v11 = vld [vmem:[%s4463_s1 + $0x558] sm:$0xf0]  ;;  %v2057_v13 = vld [vmem:[%s4463_s1 + $0xa8] sm:$0xf0]  ;;  %v2468_v19 = vor.u32 %v2877_v7, %v2465_v9 }
  0x2d   : > { %1424 = vmatpush.bf16.msra.mxu2 %v2368_v36  ;;  %v2823_v15 = vld [vmem:[%s4463_s1 + $0x214] sm:$0xf]  ;;  %v2249_v16 = vld [vmem:[%s4463_s1 + $0x228] sm:$0xf0]  ;;  %s2751_s7 = sshll.u32 %s4471_s12, 5  ;;  %v2660_v23 = vor.u32 %v2925_v10, %v2657_v11  ;;  %v2060_v31 = vor.u32 %v2775_v12, %v2057_v13  ;;  %s2752_s6 = sshll.u32 %s4471_s12, 4 }
  0x2e   : > { %1438 = vmatpush.bf16.msra.mxu3 %v2560_v39  ;;  %v2871_v17 = vld [vmem:[%s4463_s1 + $0x394] sm:$0xf]  ;;  %v2441_v20 = vld [vmem:[%s4463_s1 + $0x3a8] sm:$0xf0]  ;;  %s201_s20 = scalar_lea.vmem %s4462_s0, %s2751_s7  ;;  %v2252_v36 = vor.u32 %v2823_v15, %v2249_v16  ;;  %v2769_v38 = vld [vmem:[%s4463_s1 + $0x64] sm:$0xf]  ;;  %s211_s9 = scalar_lea.vmem %s4465_s3, %s2752_s6 }
  0x2f   : > { %1445 = vmatpush.bf16.msrb.mxu0 %v2156_v40  ;;  %v2919_v21 = vld [vmem:[%s4463_s1 + $0x514] sm:$0xf]  ;;  %v2633_v22 = vld [vmem:[%s4463_s1 + $0x528] sm:$0xf0]  ;;  %v1975_v24 = vld [vmem:[%s201_s20 + $0x8] sm:$0xf]  ;;  %v2444_v37 = vor.u32 %v2871_v17, %v2441_v20 }
  0x30   : > { %1459 = vmatpush.bf16.msrb.mxu1 %v2348_v41  ;;  %v2756_v25 = vld [vmem:[%s201_s20 + $0x14] sm:$0xf0]  ;;  %v2754_v26 = vld [vmem:[%s201_s20 + $0xc] sm:$0xf]  ;;  %v1977_v28 = vld [vmem:[%s201_s20 + $0x18] sm:$0xf0] }
  0x31   : > { %1473 = vmatpush.bf16.msrb.mxu2 %v2540_v42  ;;  %v3377_v27 = vor.u32 %v2756_v25, %v1975_v24  ;;  %v1967_v29 = vld [vmem:[%s201_s20] sm:$0xf]  ;;  %v2755_v30 = vld [vmem:[%s201_s20 + $0xc] sm:$0xf0]  ;;  %v3379_v32 = vor.u32 %v2754_v26, %v1977_v28  ;;  %v2753_v34 = vld [vmem:[%s201_s20 + $0x4] sm:$0xf]  ;;  %v2636_v42 = vor.u32 %v2919_v21, %v2633_v22 }
  0x32   : > { %1487 = vmatpush.bf16.msrb.mxu3 %v2732_v46  ;;  %v3381_v33 = vor.u32 %v2755_v30, %v1967_v29  ;;  %v1969_v35 = vld [vmem:[%s201_s20 + $0x10] sm:$0xf0]  ;;  %v2033_v39 = vld [vmem:[%s4463_s1 + $0x78] sm:$0xf0]  ;;  %v2817_v40 = vld [vmem:[%s4463_s1 + $0x1e4] sm:$0xf] }
  0x33   : > { %1446 = vmatpush.bf16.msrb.mxu0 %v2132_v52  ;;  %v3392_v41 = vor.u32 %v2753_v34, %v1969_v35  ;;  %v2225_v43 = vld [vmem:[%s4463_s1 + $0x1f8] sm:$0xf0]  ;;  %v2865_v44 = vld [vmem:[%s4463_s1 + $0x364] sm:$0xf]  ;;  %1425 = vmatmul.bf16.vlgmr.msra.gmra.mxu2 %v3377_v27  ;;  %v2036_v48 = vor.u32 %v2769_v38, %v2033_v39  ;;  %v2763_v51 = vld [vmem:[%s4463_s1 + $0x34] sm:$0xf] }
  0x34   : > { %1460 = vmatpush.bf16.msrb.mxu1 %v2324_v53  ;;  %v2417_v45 = vld [vmem:[%s4463_s1 + $0x378] sm:$0xf0]  ;;  %v2913_v46 = vld [vmem:[%s4463_s1 + $0x4e4] sm:$0xf]  ;;  %1439 = vmatmul.bf16.vlgmr.msra.gmra.mxu3 %v3379_v32  ;;  %v2228_v49 = vor.u32 %v2817_v40, %v2225_v43  ;;  %v2009_v52 = vld [vmem:[%s4463_s1 + $0x48] sm:$0xf0] }
  0x35   : > { %1474 = vmatpush.bf16.msrb.mxu2 %v2516_v54  ;;  %v2609_v47 = vld [vmem:[%s4463_s1 + $0x4f8] sm:$0xf0]  ;;  %1397 = vmatmul.bf16.vlgmr.msra.gmra.mxu0 %v3381_v33  ;;  %v2420_v50 = vor.u32 %v2865_v44, %v2417_v45  ;;  %v2811_v53 = vld [vmem:[%s4463_s1 + $0x1b4] sm:$0xf]  ;;  %v2201_v55 = vld [vmem:[%s4463_s1 + $0x1c8] sm:$0xf0]  ;;  %v2012_v60 = vor.u32 %v2763_v51, %v2009_v52 }
  0x36   : > { %1488 = vmatpush.bf16.msrb.mxu3 %v2708_v58  ;;  %1411 = vmatmul.bf16.vlgmr.msra.gmra.mxu1 %v3392_v41  ;;  %v2612_v54 = vor.u32 %v2913_v46, %v2609_v47  ;;  %v2859_v56 = vld [vmem:[%s4463_s1 + $0x334] sm:$0xf]  ;;  %v2393_v57 = vld [vmem:[%s4463_s1 + $0x348] sm:$0xf0]  ;;  %v2757_v61 = vld [vmem:[%s4463_s1 + $0x4] sm:$0xf]  ;;  %v2204_v63 = vor.u32 %v2811_v53, %v2201_v55 }
  0x37   : > { %1447 = vmatpush.bf16.msrb.mxu0 %v2108_v0  ;;  %v2907_v58 = vld [vmem:[%s4463_s1 + $0x4b4] sm:$0xf]  ;;  %v2585_v59 = vld [vmem:[%s4463_s1 + $0x4c8] sm:$0xf0]  ;;  %v1985_v62 = vld [vmem:[%s4463_s1 + $0x18] sm:$0xf0]  ;;  %v2396_v0 = vor.u32 %v2859_v56, %v2393_v57 }
  0x38   : > { %1461 = vmatpush.bf16.msrb.mxu1 %v2300_v3  ;;  %v2805_v1 = vld [vmem:[%s4463_s1 + $0x184] sm:$0xf]  ;;  %v2177_v2 = vld [vmem:[%s4463_s1 + $0x198] sm:$0xf0]  ;;  %v2803_v9 = vld [vmem:[%s4463_s1 + $0x16c] sm:$0xf0]  ;;  %v1988_v11 = vor.u32 %v2757_v61, %v1985_v62 }
  0x39   : > { %1475 = vmatpush.bf16.msrb.mxu2 %v2492_v4  ;;  %v2853_v3 = vld [vmem:[%s4463_s1 + $0x304] sm:$0xf]  ;;  %v2588_v4 = vor.u32 %v2907_v58, %v2585_v59  ;;  %v2369_v5 = vld [vmem:[%s4463_s1 + $0x318] sm:$0xf0]  ;;  %v2351_v10 = vld [vmem:[%s4463_s1 + $0x2d8] sm:$0xf]  ;;  %v2180_v15 = vor.u32 %v2805_v1, %v2177_v2 }
  0x3a   : > { %1489 = vmatpush.bf16.msrb.mxu3 %v2684_v8  ;;  %v2901_v6 = vld [vmem:[%s4463_s1 + $0x484] sm:$0xf]  ;;  %v2561_v7 = vld [vmem:[%s4463_s1 + $0x498] sm:$0xf0]  ;;  %v2159_v8 = vld [vmem:[%s4463_s1 + $0x158] sm:$0xf]  ;;  %v2372_v16 = vor.u32 %v2853_v3, %v2369_v5 }
  0x3b   : > { %1448 = vmatpush.bf16.msrb.mxu0 %v2084_v14  ;;  %v2851_v12 = vld [vmem:[%s4463_s1 + $0x2ec] sm:$0xf0]  ;;  %v2543_v13 = vld [vmem:[%s4463_s1 + $0x458] sm:$0xf]  ;;  %v2160_v20 = vor.u32 %v2803_v9, %v2159_v8  ;;  %v2797_v24 = vld [vmem:[%s4463_s1 + $0x13c] sm:$0xf0] }
  0x3c   : > { %1462 = vmatpush.bf16.msrb.mxu1 %v2276_v18  ;;  %v2899_v14 = vld [vmem:[%s4463_s1 + $0x46c] sm:$0xf0]  ;;  %v2735_v17 = vld [vmem:[%s4463_s1 + $0x5d8] sm:$0xf]  ;;  %v2352_v21 = vor.u32 %v2851_v12, %v2351_v10  ;;  %v2327_v25 = vld [vmem:[%s4463_s1 + $0x2a8] sm:$0xf] }
  0x3d   : > { %1476 = vmatpush.bf16.msrb.mxu2 %v2468_v19  ;;  %v2947_v18 = vld [vmem:[%s4463_s1 + $0x5ec] sm:$0xf0]  ;;  %v2564_v19 = vor.u32 %v2901_v6, %v2561_v7  ;;  %v2544_v22 = vor.u32 %v2899_v14, %v2543_v13  ;;  %v2845_v28 = vld [vmem:[%s4463_s1 + $0x2bc] sm:$0xf0]  ;;  %v2519_v29 = vld [vmem:[%s4463_s1 + $0x428] sm:$0xf] }
  0x3e   : > { %1490 = vmatpush.bf16.msrb.mxu3 %v2660_v23  ;;  %v2135_v23 = vld [vmem:[%s4463_s1 + $0x128] sm:$0xf]  ;;  %v2736_v26 = vor.u32 %v2947_v18, %v2735_v17  ;;  %v2893_v30 = vld [vmem:[%s4463_s1 + $0x43c] sm:$0xf0]  ;;  %v2111_v38 = vld [vmem:[%s4463_s1 + $0xf8] sm:$0xf] }
  0x3f   : > { %1449 = vmatpush.bf16.msrb.mxu0 %v2060_v31  ;;  %v2711_v31 = vld [vmem:[%s4463_s1 + $0x5a8] sm:$0xf]  ;;  %v2941_v34 = vld [vmem:[%s4463_s1 + $0x5bc] sm:$0xf0]  ;;  %v2136_v35 = vor.u32 %v2797_v24, %v2135_v23  ;;  %v2791_v39 = vld [vmem:[%s4463_s1 + $0x10c] sm:$0xf0] }
  0x40   : > { %1463 = vmatpush.bf16.msrb.mxu1 %v2252_v36  ;;  %v2328_v36 = vor.u32 %v2845_v28, %v2327_v25  ;;  %v2303_v40 = vld [vmem:[%s4463_s1 + $0x278] sm:$0xf]  ;;  %v2839_v43 = vld [vmem:[%s4463_s1 + $0x28c] sm:$0xf0]  ;;  %v2087_v51 = vld [vmem:[%s4463_s1 + $0xc8] sm:$0xf] }
  0x41   : > { %1477 = vmatpush.bf16.msrb.mxu2 %v2444_v37  ;;  %v2520_v37 = vor.u32 %v2893_v30, %v2519_v29  ;;  %v2495_v44 = vld [vmem:[%s4463_s1 + $0x3f8] sm:$0xf]  ;;  %v2887_v45 = vld [vmem:[%s4463_s1 + $0x40c] sm:$0xf0]  ;;  %v2785_v52 = vld [vmem:[%s4463_s1 + $0xdc] sm:$0xf0] }
  0x42   : > { %1491 = vmatpush.bf16.msrb.mxu3 %v2636_v42  ;;  %v2712_v42 = vor.u32 %v2941_v34, %v2711_v31  ;;  %v2687_v46 = vld [vmem:[%s4463_s1 + $0x578] sm:$0xf]  ;;  %v2935_v47 = vld [vmem:[%s4463_s1 + $0x58c] sm:$0xf0]  ;;  %v2279_v53 = vld [vmem:[%s4463_s1 + $0x248] sm:$0xf] }
  0x43   : > { %1450 = vmatpush.bf16.msrb.mxu0 %v2036_v48  ;;  %v2112_v48 = vor.u32 %v2791_v39, %v2111_v38  ;;  %v2833_v55 = vld [vmem:[%s4463_s1 + $0x25c] sm:$0xf0]  ;;  %v2471_v56 = vld [vmem:[%s4463_s1 + $0x3c8] sm:$0xf]  ;;  %v2255_v1 = vld [vmem:[%s4463_s1 + $0x218] sm:$0xf] }
  0x44   : > { %1464 = vmatpush.bf16.msrb.mxu1 %v2228_v49  ;;  %v2304_v49 = vor.u32 %v2839_v43, %v2303_v40  ;;  %v2881_v57 = vld [vmem:[%s4463_s1 + $0x3dc] sm:$0xf0]  ;;  %v2663_v58 = vld [vmem:[%s4463_s1 + $0x548] sm:$0xf]  ;;  %v2280_v61 = vor.u32 %v2833_v55, %v2279_v53  ;;  %v2827_v3 = vld [vmem:[%s4463_s1 + $0x22c] sm:$0xf0] }
  0x45   : > { %1478 = vmatpush.bf16.msrb.mxu2 %v2420_v50  ;;  %v2496_v50 = vor.u32 %v2887_v45, %v2495_v44  ;;  %v2929_v59 = vld [vmem:[%s4463_s1 + $0x55c] sm:$0xf0]  ;;  %v2472_v62 = vor.u32 %v2881_v57, %v2471_v56  ;;  %v2875_v5 = vld [vmem:[%s4463_s1 + $0x3ac] sm:$0xf0]  ;;  %v2639_v6 = vld [vmem:[%s4463_s1 + $0x518] sm:$0xf]  ;;  %v2256_v9 = vor.u32 %v2827_v3, %v2255_v1 }
  0x46   : > { %1492 = vmatpush.bf16.msrb.mxu3 %v2612_v54  ;;  %v2688_v54 = vor.u32 %v2935_v47, %v2687_v46  ;;  %v2664_v2 = vor.u32 %v2929_v59, %v2663_v58  ;;  %v2923_v7 = vld [vmem:[%s4463_s1 + $0x52c] sm:$0xf0]  ;;  %v2773_v12 = vld [vmem:[%s4463_s1 + $0x7c] sm:$0xf0]  ;;  %v2231_v13 = vld [vmem:[%s4463_s1 + $0x1e8] sm:$0xf] }
  0x47   : > { %1451 = vmatpush.bf16.msrb.mxu0 %v2012_v60  ;;  %v2088_v60 = vor.u32 %v2785_v52, %v2087_v51  ;;  %v2640_v14 = vor.u32 %v2923_v7, %v2639_v6  ;;  %v2869_v17 = vld [vmem:[%s4463_s1 + $0x37c] sm:$0xf0]  ;;  %v2615_v18 = vld [vmem:[%s4463_s1 + $0x4e8] sm:$0xf]  ;;  %v2015_v23 = vld [vmem:[%s4463_s1 + $0x38] sm:$0xf] }
  0x48   : > { %1465 = vmatpush.bf16.msrb.mxu1 %v2204_v63  ;;  %v2063_v63 = vld [vmem:[%s4463_s1 + $0x98] sm:$0xf]  ;;  %v2767_v24 = vld [vmem:[%s4463_s1 + $0x4c] sm:$0xf0]  ;;  %v2183_v40 = vld [vmem:[%s4463_s1 + $0x188] sm:$0xf] }
  0x49   : > { %1479 = vmatpush.bf16.msrb.mxu2 %v2396_v0  ;;  %v2779_v0 = vld [vmem:[%s4463_s1 + $0xac] sm:$0xf0]  ;;  %v2207_v25 = vld [vmem:[%s4463_s1 + $0x1b8] sm:$0xf]  ;;  %v2375_v43 = vld [vmem:[%s4463_s1 + $0x308] sm:$0xf] }
  0x4a   : > { %1493 = vmatpush.bf16.msrb.mxu3 %v2588_v4  ;;  %v2447_v4 = vld [vmem:[%s4463_s1 + $0x398] sm:$0xf]  ;;  %v2064_v8 = vor.u32 %v2779_v0, %v2063_v63  ;;  %v2815_v28 = vld [vmem:[%s4463_s1 + $0x1cc] sm:$0xf0]  ;;  %v2857_v45 = vld [vmem:[%s4463_s1 + $0x31c] sm:$0xf0] }
  0x4b   : > { %1452 = vmatpush.bf16.msrb.mxu0 %v1988_v11  ;;  %v2448_v10 = vor.u32 %v2875_v5, %v2447_v4  ;;  %v2039_v11 = vld [vmem:[%s4463_s1 + $0x68] sm:$0xf]  ;;  %v2399_v29 = vld [vmem:[%s4463_s1 + $0x338] sm:$0xf]  ;;  %v2863_v30 = vld [vmem:[%s4463_s1 + $0x34c] sm:$0xf0]  ;;  %v2208_v38 = vor.u32 %v2815_v28, %v2207_v25  ;;  %v2376_v56 = vor.u32 %v2857_v45, %v2375_v43 }
  0x4c   : > { %1466 = vmatpush.bf16.msrb.mxu1 %v2180_v15  ;;  %v2821_v15 = vld [vmem:[%s4463_s1 + $0x1fc] sm:$0xf0]  ;;  %v2591_v31 = vld [vmem:[%s4463_s1 + $0x4b8] sm:$0xf]  ;;  %v2911_v34 = vld [vmem:[%s4463_s1 + $0x4cc] sm:$0xf0]  ;;  %v2400_v39 = vor.u32 %v2863_v30, %v2399_v29 }
  0x4d   : > { %1480 = vmatpush.bf16.msrb.mxu2 %v2372_v16  ;;  %v2423_v16 = vld [vmem:[%s4463_s1 + $0x368] sm:$0xf]  ;;  %v2592_v44 = vor.u32 %v2911_v34, %v2591_v31  ;;  %v2905_v47 = vld [vmem:[%s4463_s1 + $0x49c] sm:$0xf0]  ;;  %v2353_v52 = vld [vmem:[%s4463_s1 + $0x2f0] sm:$0xf0] }
  0x4e   : > { %1494 = vmatpush.bf16.msrb.mxu3 %v2564_v19  ;;  %1453 = vmatmul.bf16.vlgmr.msrb.gmra.mxu0 %v3381_v33  ;;  %v2917_v19 = vld [vmem:[%s4463_s1 + $0x4fc] sm:$0xf0]  ;;  %v2567_v46 = vld [vmem:[%s4463_s1 + $0x488] sm:$0xf]  ;;  %v2896_v53 = vld [vmem:[%s4463_s1 + $0x45c] sm:$0xf] }
  0x4f   : > { %1501 = vmatpush.bf16.msra.mxu0 %v2160_v20  ;;  %1467 = vmatmul.bf16.vlgmr.msrb.gmra.mxu1 %v3392_v41  ;;  %v2040_v20 = vor.u32 %v2773_v12, %v2039_v11  ;;  %v2944_v57 = vld [vmem:[%s4463_s1 + $0x5dc] sm:$0xf]  ;;  %v2737_v58 = vld [vmem:[%s4463_s1 + $0x5f0] sm:$0xf0]  ;;  %v2568_v59 = vor.u32 %v2905_v47, %v2567_v46  ;;  %v2794_v63 = vld [vmem:[%s4463_s1 + $0x12c] sm:$0xf] }
  0x50   : > { %1515 = vmatpush.bf16.msra.mxu1 %v2352_v21  ;;  %1481 = vmatmul.bf16.vlgmr.msrb.gmra.mxu2 %v3377_v27  ;;  %v2232_v21 = vor.u32 %v2821_v15, %v2231_v13  ;;  %v2137_v0 = vld [vmem:[%s4463_s1 + $0x140] sm:$0xf0]  ;;  %v2842_v1 = vld [vmem:[%s4463_s1 + $0x2ac] sm:$0xf]  ;;  %v2788_v11 = vld [vmem:[%s4463_s1 + $0xfc] sm:$0xf] }
  0x51   : > { %1529 = vmatpush.bf16.msra.mxu2 %v2544_v22  ;;  %1495 = vmatmul.bf16.vlgmr.msrb.gmra.mxu3 %v3379_v32  ;;  %v2424_v22 = vor.u32 %v2869_v17, %v2423_v16  ;;  %v2329_v3 = vld [vmem:[%s4463_s1 + $0x2c0] sm:$0xf0]  ;;  %v2890_v4 = vld [vmem:[%s4463_s1 + $0x42c] sm:$0xf]  ;;  %v2113_v12 = vld [vmem:[%s4463_s1 + $0x110] sm:$0xf0] }
  0x52   : > { %1543 = vmatpush.bf16.msra.mxu3 %v2736_v26  ;;  %v2616_v26 = vor.u32 %v2917_v19, %v2615_v18  ;;  %v2521_v5 = vld [vmem:[%s4463_s1 + $0x440] sm:$0xf0]  ;;  %v2938_v6 = vld [vmem:[%s4463_s1 + $0x5ac] sm:$0xf]  ;;  %v2836_v13 = vld [vmem:[%s4463_s1 + $0x27c] sm:$0xf] }
  0x53   : > { %1502 = vmatpush.bf16.msra.mxu0 %v2136_v35  ;;  %v2016_v35 = vor.u32 %v2767_v24, %v2015_v23  ;;  %v2713_v7 = vld [vmem:[%s4463_s1 + $0x5c0] sm:$0xf0]  ;;  %v2305_v15 = vld [vmem:[%s4463_s1 + $0x290] sm:$0xf0]  ;;  %v2884_v16 = vld [vmem:[%s4463_s1 + $0x3fc] sm:$0xf] }
  0x54   : > { %1516 = vmatpush.bf16.msra.mxu1 %v2328_v36  ;;  %v1991_v36 = vld [vmem:[%s4463_s1 + $0x8] sm:$0xf]  ;;  %v2497_v17 = vld [vmem:[%s4463_s1 + $0x410] sm:$0xf0]  ;;  %v2932_v18 = vld [vmem:[%s4463_s1 + $0x57c] sm:$0xf] }
  0x55   : > { %1530 = vmatpush.bf16.msra.mxu2 %v2520_v37  ;;  %v2761_v37 = vld [vmem:[%s4463_s1 + $0x1c] sm:$0xf0]  ;;  %v2689_v19 = vld [vmem:[%s4463_s1 + $0x590] sm:$0xf0]  ;;  %v2782_v23 = vld [vmem:[%s4463_s1 + $0xcc] sm:$0xf] }
  0x56   : > { %1544 = vmatpush.bf16.msra.mxu3 %v2712_v42  ;;  %v2809_v42 = vld [vmem:[%s4463_s1 + $0x19c] sm:$0xf0]  ;;  %v1992_v51 = vor.u32 %v2761_v37, %v1991_v36  ;;  %v2089_v24 = vld [vmem:[%s4463_s1 + $0xe0] sm:$0xf0]  ;;  %v2830_v25 = vld [vmem:[%s4463_s1 + $0x24c] sm:$0xf] }
  0x57   : > { %1503 = vmatpush.bf16.msra.mxu0 %v2112_v48  ;;  %v2800_v48 = vld [vmem:[%s4463_s1 + $0x15c] sm:$0xf]  ;;  %v2184_v55 = vor.u32 %v2809_v42, %v2183_v40  ;;  %v2281_v28 = vld [vmem:[%s4463_s1 + $0x260] sm:$0xf0]  ;;  %v2878_v29 = vld [vmem:[%s4463_s1 + $0x3cc] sm:$0xf] }
  0x58   : > { %1517 = vmatpush.bf16.msra.mxu1 %v2304_v49  ;;  %v2161_v49 = vld [vmem:[%s4463_s1 + $0x170] sm:$0xf0]  ;;  %v2473_v30 = vld [vmem:[%s4463_s1 + $0x3e0] sm:$0xf0]  ;;  %v2926_v31 = vld [vmem:[%s4463_s1 + $0x54c] sm:$0xf]  ;;  %v2284_v36 = vor.u32 %v2830_v25, %v2281_v28 }
  0x59   : > { %1531 = vmatpush.bf16.msra.mxu2 %v2496_v50  ;;  %v2848_v50 = vld [vmem:[%s4463_s1 + $0x2dc] sm:$0xf]  ;;  %v2665_v34 = vld [vmem:[%s4463_s1 + $0x560] sm:$0xf0]  ;;  %v2476_v37 = vor.u32 %v2878_v29, %v2473_v30  ;;  %v2257_v43 = vld [vmem:[%s4463_s1 + $0x230] sm:$0xf0] }
  0x5a   : > { %1545 = vmatpush.bf16.msra.mxu3 %v2688_v54  ;;  %v2545_v54 = vld [vmem:[%s4463_s1 + $0x470] sm:$0xf0]  ;;  %v2824_v40 = vld [vmem:[%s4463_s1 + $0x21c] sm:$0xf]  ;;  %v2668_v42 = vor.u32 %v2926_v31, %v2665_v34  ;;  %v2551_v25 = vld [vmem:[%s4463_s1 + $0x460] sm:$0xf] }
  0x5b   : > { %1504 = vmatpush.bf16.msra.mxu0 %v2088_v60  ;;  %v2164_v60 = vor.u32 %v2800_v48, %v2161_v49  ;;  %v2449_v45 = vld [vmem:[%s4463_s1 + $0x3b0] sm:$0xf0]  ;;  %v2920_v46 = vld [vmem:[%s4463_s1 + $0x51c] sm:$0xf]  ;;  %v2260_v49 = vor.u32 %v2824_v40, %v2257_v43  ;;  %v2743_v30 = vld [vmem:[%s4463_s1 + $0x5e0] sm:$0xf] }
  0x5c   : > { %1518 = vmatpush.bf16.msra.mxu1 %v2280_v61  ;;  %v2356_v61 = vor.u32 %v2848_v50, %v2353_v52  ;;  %v2641_v47 = vld [vmem:[%s4463_s1 + $0x530] sm:$0xf0]  ;;  %v2041_v52 = vld [vmem:[%s4463_s1 + $0x80] sm:$0xf0]  ;;  %v2948_v31 = vld [vmem:[%s4463_s1 + $0x5f4] sm:$0xf0] }
  0x5d   : > { %1532 = vmatpush.bf16.msra.mxu2 %v2472_v62  ;;  %v2548_v62 = vor.u32 %v2896_v53, %v2545_v54  ;;  %v2818_v53 = vld [vmem:[%s4463_s1 + $0x1ec] sm:$0xf]  ;;  %v2644_v54 = vor.u32 %v2920_v46, %v2641_v47  ;;  %v2335_v40 = vld [vmem:[%s4463_s1 + $0x2b0] sm:$0xf]  ;;  %v2846_v43 = vld [vmem:[%s4463_s1 + $0x2c4] sm:$0xf0] }
  0x5e   : > { %1546 = vmatpush.bf16.msra.mxu3 %v2664_v2  ;;  %v2740_v2 = vor.u32 %v2944_v57, %v2737_v58  ;;  %v2425_v57 = vld [vmem:[%s4463_s1 + $0x380] sm:$0xf0]  ;;  %v2914_v58 = vld [vmem:[%s4463_s1 + $0x4ec] sm:$0xf]  ;;  %v2719_v46 = vld [vmem:[%s4463_s1 + $0x5b0] sm:$0xf] }
  0x5f   : > { %1505 = vmatpush.bf16.msra.mxu0 %v2064_v8  ;;  %v2140_v8 = vor.u32 %v2794_v63, %v2137_v0  ;;  %v2764_v63 = vld [vmem:[%s4463_s1 + $0x3c] sm:$0xf]  ;;  %v2017_v0 = vld [vmem:[%s4463_s1 + $0x50] sm:$0xf0]  ;;  %v2942_v47 = vld [vmem:[%s4463_s1 + $0x5c4] sm:$0xf0] }
  0x60   : > { %1519 = vmatpush.bf16.msra.mxu1 %v2256_v9  ;;  %v2332_v9 = vor.u32 %v2842_v1, %v2329_v3  ;;  %v2812_v1 = vld [vmem:[%s4463_s1 + $0x1bc] sm:$0xf]  ;;  %v2209_v3 = vld [vmem:[%s4463_s1 + $0x1d0] sm:$0xf0] }
  0x61   : > { %1533 = vmatpush.bf16.msra.mxu2 %v2448_v10  ;;  %v2524_v10 = vor.u32 %v2890_v4, %v2521_v5  ;;  %v2860_v4 = vld [vmem:[%s4463_s1 + $0x33c] sm:$0xf]  ;;  %v2401_v5 = vld [vmem:[%s4463_s1 + $0x350] sm:$0xf0] }
  0x62   : > { %1547 = vmatpush.bf16.msra.mxu3 %v2640_v14  ;;  %v2716_v14 = vor.u32 %v2938_v6, %v2713_v7  ;;  %v2908_v6 = vld [vmem:[%s4463_s1 + $0x4bc] sm:$0xf]  ;;  %v2593_v7 = vld [vmem:[%s4463_s1 + $0x4d0] sm:$0xf0] }
  0x63   : > { %1506 = vmatpush.bf16.msra.mxu0 %v2040_v20  ;;  %v2116_v20 = vor.u32 %v2788_v11, %v2113_v12  ;;  %v2212_v11 = vor.u32 %v2812_v1, %v2209_v3  ;;  %v2404_v12 = vor.u32 %v2860_v4, %v2401_v5  ;;  %v2287_v1 = vld [vmem:[%s4463_s1 + $0x250] sm:$0xf]  ;;  %v2834_v3 = vld [vmem:[%s4463_s1 + $0x264] sm:$0xf0] }
  0x64   : > { %1520 = vmatpush.bf16.msra.mxu1 %v2232_v21  ;;  %v2308_v21 = vor.u32 %v2836_v13, %v2305_v15  ;;  %v2806_v13 = vld [vmem:[%s4463_s1 + $0x18c] sm:$0xf]  ;;  %v2479_v4 = vld [vmem:[%s4463_s1 + $0x3d0] sm:$0xf]  ;;  %v2882_v5 = vld [vmem:[%s4463_s1 + $0x3e4] sm:$0xf0] }
  0x65   : > { %1534 = vmatpush.bf16.msra.mxu2 %v2424_v22  ;;  %v2500_v22 = vor.u32 %v2884_v16, %v2497_v17  ;;  %v2854_v15 = vld [vmem:[%s4463_s1 + $0x30c] sm:$0xf]  ;;  %v2596_v16 = vor.u32 %v2908_v6, %v2593_v7  ;;  %v2377_v17 = vld [vmem:[%s4463_s1 + $0x320] sm:$0xf0]  ;;  %v2671_v6 = vld [vmem:[%s4463_s1 + $0x550] sm:$0xf] }
  0x66   : > { %1548 = vmatpush.bf16.msra.mxu3 %v2616_v26  ;;  %v2692_v26 = vor.u32 %v2932_v18, %v2689_v19  ;;  %v2902_v18 = vld [vmem:[%s4463_s1 + $0x48c] sm:$0xf]  ;;  %v2569_v19 = vld [vmem:[%s4463_s1 + $0x4a0] sm:$0xf0]  ;;  %v2380_v29 = vor.u32 %v2854_v15, %v2377_v17  ;;  %v2930_v7 = vld [vmem:[%s4463_s1 + $0x564] sm:$0xf0] }
  0x67   : > { %1507 = vmatpush.bf16.msra.mxu0 %v2016_v35  ;;  %v2092_v35 = vor.u32 %v2782_v23, %v2089_v24  ;;  %v2852_v24 = vld [vmem:[%s4463_s1 + $0x2f4] sm:$0xf0]  ;;  %v2572_v34 = vor.u32 %v2902_v18, %v2569_v19  ;;  %v2647_v18 = vld [vmem:[%s4463_s1 + $0x520] sm:$0xf] }
  0x68   : > { %1521 = vmatpush.bf16.msra.mxu1 %v2208_v38  ;;  %v2776_v38 = vld [vmem:[%s4463_s1 + $0x9c] sm:$0xf]  ;;  %v2828_v15 = vld [vmem:[%s4463_s1 + $0x234] sm:$0xf0] }
  0x69   : > { %1535 = vmatpush.bf16.msra.mxu2 %v2400_v39  ;;  %v2065_v39 = vld [vmem:[%s4463_s1 + $0xb0] sm:$0xf0]  ;;  %v2876_v17 = vld [vmem:[%s4463_s1 + $0x3b4] sm:$0xf0] }
  0x6a   : > { %1549 = vmatpush.bf16.msra.mxu3 %v2592_v44  ;;  %v2872_v44 = vld [vmem:[%s4463_s1 + $0x39c] sm:$0xf]  ;;  %v2068_v48 = vor.u32 %v2776_v38, %v2065_v39  ;;  %v2143_v38 = vld [vmem:[%s4463_s1 + $0x130] sm:$0xf]  ;;  %v2798_v39 = vld [vmem:[%s4463_s1 + $0x144] sm:$0xf0] }
  0x6b   : > { %1508 = vmatpush.bf16.msra.mxu0 %v1992_v51  ;;  %v2452_v50 = vor.u32 %v2872_v44, %v2449_v45  ;;  %v2770_v51 = vld [vmem:[%s4463_s1 + $0x6c] sm:$0xf]  ;;  %v2527_v44 = vld [vmem:[%s4463_s1 + $0x430] sm:$0xf]  ;;  %v2894_v45 = vld [vmem:[%s4463_s1 + $0x444] sm:$0xf0] }
  0x6c   : > { %1522 = vmatpush.bf16.msra.mxu1 %v2184_v55  ;;  %v2233_v55 = vld [vmem:[%s4463_s1 + $0x200] sm:$0xf0]  ;;  %v2924_v19 = vld [vmem:[%s4463_s1 + $0x534] sm:$0xf0] }
  0x6d   : > { %1536 = vmatpush.bf16.msra.mxu2 %v2376_v56  ;;  %v2866_v56 = vld [vmem:[%s4463_s1 + $0x36c] sm:$0xf] }
  0x6e   : > { %1550 = vmatpush.bf16.msra.mxu3 %v2568_v59  ;;  %1509 = vmatmul.bf16.vlgmr.msra.gmra.mxu0 %v3381_v33  ;;  %v2617_v59 = vld [vmem:[%s4463_s1 + $0x500] sm:$0xf0] }
  0x6f   : > { %1557 = vmatpush.bf16.msrb.mxu0 %v2164_v60  ;;  %1523 = vmatmul.bf16.vlgmr.msra.gmra.mxu1 %v3392_v41  ;;  %v2044_v60 = vor.u32 %v2770_v51, %v2041_v52  ;;  %v2119_v51 = vld [vmem:[%s4463_s1 + $0x100] sm:$0xf]  ;;  %v2792_v52 = vld [vmem:[%s4463_s1 + $0x114] sm:$0xf0] }
  0x70   : > { %1571 = vmatpush.bf16.msrb.mxu1 %v2356_v61  ;;  %1537 = vmatmul.bf16.vlgmr.msra.gmra.mxu2 %v3377_v27  ;;  %v2236_v61 = vor.u32 %v2818_v53, %v2233_v55  ;;  %v2311_v53 = vld [vmem:[%s4463_s1 + $0x280] sm:$0xf]  ;;  %v2840_v55 = vld [vmem:[%s4463_s1 + $0x294] sm:$0xf0] }
  0x71   : > { %1585 = vmatpush.bf16.msrb.mxu2 %v2548_v62  ;;  %1551 = vmatmul.bf16.vlgmr.msra.gmra.mxu3 %v3379_v32  ;;  %v2428_v62 = vor.u32 %v2866_v56, %v2425_v57  ;;  %v2503_v56 = vld [vmem:[%s4463_s1 + $0x400] sm:$0xf]  ;;  %v2888_v57 = vld [vmem:[%s4463_s1 + $0x414] sm:$0xf0] }
  0x72   : > { %1599 = vmatpush.bf16.msrb.mxu3 %v2740_v2  ;;  %v2620_v2 = vor.u32 %v2914_v58, %v2617_v59  ;;  %v2695_v58 = vld [vmem:[%s4463_s1 + $0x580] sm:$0xf]  ;;  %v2936_v59 = vld [vmem:[%s4463_s1 + $0x594] sm:$0xf0] }
  0x73   : > { %1558 = vmatpush.bf16.msrb.mxu0 %v2140_v8  ;;  %v2020_v8 = vor.u32 %v2764_v63, %v2017_v0  ;;  %v2095_v63 = vld [vmem:[%s4463_s1 + $0xd0] sm:$0xf]  ;;  %v2786_v0 = vld [vmem:[%s4463_s1 + $0xe4] sm:$0xf0] }
  0x74   : > { %1572 = vmatpush.bf16.msrb.mxu1 %v2332_v9  ;;  %v2758_v9 = vld [vmem:[%s4463_s1 + $0xc] sm:$0xf] }
  0x75   : > { %1586 = vmatpush.bf16.msrb.mxu2 %v2524_v10  ;;  %v1993_v10 = vld [vmem:[%s4463_s1 + $0x20] sm:$0xf0] }
  0x76   : > { %1600 = vmatpush.bf16.msrb.mxu3 %v2716_v14  ;;  %v2185_v14 = vld [vmem:[%s4463_s1 + $0x1a0] sm:$0xf0]  ;;  %v1996_v23 = vor.u32 %v2758_v9, %v1993_v10  ;;  %v2288_v9 = vor.u32 %v2834_v3, %v2287_v1  ;;  %v2480_v10 = vor.u32 %v2882_v5, %v2479_v4 }
  0x77   : > { %1559 = vmatpush.bf16.msrb.mxu0 %v2116_v20  ;;  %v2167_v20 = vld [vmem:[%s4463_s1 + $0x160] sm:$0xf]  ;;  %v2188_v28 = vor.u32 %v2806_v13, %v2185_v14  ;;  %v2672_v14 = vor.u32 %v2930_v7, %v2671_v6  ;;  %v2897_v1 = vld [vmem:[%s4463_s1 + $0x464] sm:$0xf]  ;;  %v2745_v6 = vld [vmem:[%s4463_s1 + $0x5f8] sm:$0xf0] }
  0x78   : > { %1573 = vmatpush.bf16.msrb.mxu1 %v2308_v21  ;;  %v2804_v21 = vld [vmem:[%s4463_s1 + $0x174] sm:$0xf0]  ;;  %v2263_v13 = vld [vmem:[%s4463_s1 + $0x220] sm:$0xf]  ;;  %v2945_v5 = vld [vmem:[%s4463_s1 + $0x5e4] sm:$0xf] }
  0x79   : > { %1587 = vmatpush.bf16.msrb.mxu2 %v2500_v22  ;;  %v2359_v22 = vld [vmem:[%s4463_s1 + $0x2e0] sm:$0xf] }
  0x7a   : > { %1601 = vmatpush.bf16.msrb.mxu3 %v2692_v26  ;;  %v2900_v26 = vld [vmem:[%s4463_s1 + $0x474] sm:$0xf0] }
  0x7b   : > { %1560 = vmatpush.bf16.msrb.mxu0 %v2092_v35  ;;  %v2168_v35 = vor.u32 %v2804_v21, %v2167_v20  ;;  %v2264_v21 = vor.u32 %v2828_v15, %v2263_v13  ;;  %v2843_v13 = vld [vmem:[%s4463_s1 + $0x2b4] sm:$0xf]  ;;  %v2337_v15 = vld [vmem:[%s4463_s1 + $0x2c8] sm:$0xf0] }
  0x7c   : > { %1574 = vmatpush.bf16.msrb.mxu1 %v2284_v36  ;;  %v2360_v36 = vor.u32 %v2852_v24, %v2359_v22  ;;  %v2774_v24 = vld [vmem:[%s4463_s1 + $0x84] sm:$0xf0] }
  0x7d   : > { %1588 = vmatpush.bf16.msrb.mxu2 %v2476_v37  ;;  %v2552_v37 = vor.u32 %v2900_v26, %v2551_v25  ;;  %v2239_v25 = vld [vmem:[%s4463_s1 + $0x1f0] sm:$0xf]  ;;  %v2648_v26 = vor.u32 %v2924_v19, %v2647_v18  ;;  %v2939_v18 = vld [vmem:[%s4463_s1 + $0x5b4] sm:$0xf]  ;;  %v2721_v19 = vld [vmem:[%s4463_s1 + $0x5c8] sm:$0xf0] }
  0x7e   : > { %1602 = vmatpush.bf16.msrb.mxu3 %v2668_v42  ;;  %v2744_v42 = vor.u32 %v2948_v31, %v2743_v30  ;;  %v2870_v30 = vld [vmem:[%s4463_s1 + $0x384] sm:$0xf0]  ;;  %v2623_v31 = vld [vmem:[%s4463_s1 + $0x4f0] sm:$0xf] }
  0x7f   : > { %1561 = vmatpush.bf16.msrb.mxu0 %v2068_v48  ;;  %v2144_v48 = vor.u32 %v2798_v39, %v2143_v38  ;;  %v2023_v38 = vld [vmem:[%s4463_s1 + $0x40] sm:$0xf]  ;;  %v2768_v39 = vld [vmem:[%s4463_s1 + $0x54] sm:$0xf0] }
  0x80   : > { %1575 = vmatpush.bf16.msrb.mxu1 %v2260_v49  ;;  %v2336_v49 = vor.u32 %v2846_v43, %v2335_v40  ;;  %v2215_v40 = vld [vmem:[%s4463_s1 + $0x1c0] sm:$0xf]  ;;  %v2816_v43 = vld [vmem:[%s4463_s1 + $0x1d4] sm:$0xf0] }
  0x81   : > { %1589 = vmatpush.bf16.msrb.mxu2 %v2452_v50  ;;  %v2528_v50 = vor.u32 %v2894_v45, %v2527_v44  ;;  %v2407_v44 = vld [vmem:[%s4463_s1 + $0x340] sm:$0xf]  ;;  %v2864_v45 = vld [vmem:[%s4463_s1 + $0x354] sm:$0xf0] }
  0x82   : > { %1603 = vmatpush.bf16.msrb.mxu3 %v2644_v54  ;;  %v2720_v54 = vor.u32 %v2942_v47, %v2719_v46  ;;  %v2599_v46 = vld [vmem:[%s4463_s1 + $0x4c0] sm:$0xf]  ;;  %v2912_v47 = vld [vmem:[%s4463_s1 + $0x4d4] sm:$0xf0] }
  0x83   : > { %1562 = vmatpush.bf16.msrb.mxu0 %v2044_v60  ;;  %v2120_v60 = vor.u32 %v2792_v52, %v2119_v51  ;;  %v2216_v51 = vor.u32 %v2816_v43, %v2215_v40  ;;  %v2408_v52 = vor.u32 %v2864_v45, %v2407_v44  ;;  %v2831_v40 = vld [vmem:[%s4463_s1 + $0x254] sm:$0xf]  ;;  %v2289_v43 = vld [vmem:[%s4463_s1 + $0x268] sm:$0xf0] }
  0x84   : > { %1576 = vmatpush.bf16.msrb.mxu1 %v2236_v61  ;;  %v2312_v61 = vor.u32 %v2840_v55, %v2311_v53  ;;  %v2191_v53 = vld [vmem:[%s4463_s1 + $0x190] sm:$0xf]  ;;  %v2879_v44 = vld [vmem:[%s4463_s1 + $0x3d4] sm:$0xf]  ;;  %v2481_v45 = vld [vmem:[%s4463_s1 + $0x3e8] sm:$0xf0] }
  0x85   : > { %1590 = vmatpush.bf16.msrb.mxu2 %v2428_v62  ;;  %v2504_v62 = vor.u32 %v2888_v57, %v2503_v56  ;;  %v2383_v55 = vld [vmem:[%s4463_s1 + $0x310] sm:$0xf]  ;;  %v2600_v56 = vor.u32 %v2912_v47, %v2599_v46  ;;  %v2858_v57 = vld [vmem:[%s4463_s1 + $0x324] sm:$0xf0]  ;;  %v2927_v46 = vld [vmem:[%s4463_s1 + $0x554] sm:$0xf] }
  0x86   : > { %1604 = vmatpush.bf16.msrb.mxu3 %v2620_v2  ;;  %v2696_v2 = vor.u32 %v2936_v59, %v2695_v58  ;;  %v2575_v58 = vld [vmem:[%s4463_s1 + $0x490] sm:$0xf]  ;;  %v2906_v59 = vld [vmem:[%s4463_s1 + $0x4a4] sm:$0xf0]  ;;  %v2384_v4 = vor.u32 %v2858_v57, %v2383_v55  ;;  %v2673_v47 = vld [vmem:[%s4463_s1 + $0x568] sm:$0xf0] }
  0x87   : > { %1563 = vmatpush.bf16.msrb.mxu0 %v2020_v8  ;;  %v2096_v8 = vor.u32 %v2786_v0, %v2095_v63  ;;  %v2361_v0 = vld [vmem:[%s4463_s1 + $0x2f8] sm:$0xf0]  ;;  %v2576_v7 = vor.u32 %v2906_v59, %v2575_v58  ;;  %v2921_v58 = vld [vmem:[%s4463_s1 + $0x524] sm:$0xf] }
  0x88   : > { %1577 = vmatpush.bf16.msrb.mxu1 %v2212_v11  ;;  %v2071_v11 = vld [vmem:[%s4463_s1 + $0xa0] sm:$0xf]  ;;  %v2265_v55 = vld [vmem:[%s4463_s1 + $0x238] sm:$0xf0] }
  0x89   : > { %1591 = vmatpush.bf16.msrb.mxu2 %v2404_v12  ;;  %v2780_v12 = vld [vmem:[%s4463_s1 + $0xb4] sm:$0xf0]  ;;  %v2457_v57 = vld [vmem:[%s4463_s1 + $0x3b8] sm:$0xf0] }
  0x8a   : > { %1605 = vmatpush.bf16.msrb.mxu3 %v2596_v16  ;;  %v2455_v16 = vld [vmem:[%s4463_s1 + $0x3a0] sm:$0xf]  ;;  %v2072_v20 = vor.u32 %v2780_v12, %v2071_v11  ;;  %v2795_v11 = vld [vmem:[%s4463_s1 + $0x134] sm:$0xf]  ;;  %v2145_v12 = vld [vmem:[%s4463_s1 + $0x148] sm:$0xf0] }
  0x8b   : > { %1564 = vmatpush.bf16.msrb.mxu0 %v1996_v23  ;;  %v2456_v22 = vor.u32 %v2876_v17, %v2455_v16  ;;  %v2047_v23 = vld [vmem:[%s4463_s1 + $0x70] sm:$0xf]  ;;  %v2891_v16 = vld [vmem:[%s4463_s1 + $0x434] sm:$0xf]  ;;  %v2529_v17 = vld [vmem:[%s4463_s1 + $0x448] sm:$0xf0] }
  0x8c   : > { %1578 = vmatpush.bf16.msrb.mxu1 %v2188_v28  ;;  %v2822_v28 = vld [vmem:[%s4463_s1 + $0x204] sm:$0xf0]  ;;  %v2649_v59 = vld [vmem:[%s4463_s1 + $0x538] sm:$0xf0] }
  0x8d   : > { %1592 = vmatpush.bf16.msrb.mxu2 %v2380_v29  ;;  %v2431_v29 = vld [vmem:[%s4463_s1 + $0x370] sm:$0xf] }
  0x8e   : > { %1606 = vmatpush.bf16.msrb.mxu3 %v2572_v34  ;;  %1565 = vmatmul.bf16.vlgmr.msrb.gmra.mxu0 %v3381_v33  ;;  %v2918_v34 = vld [vmem:[%s4463_s1 + $0x504] sm:$0xf0] }
  0x8f   : > { %1613 = vmatpush.bf16.msra.mxu0 %v2168_v35  ;;  %1579 = vmatmul.bf16.vlgmr.msrb.gmra.mxu1 %v3392_v41  ;;  %v2048_v35 = vor.u32 %v2774_v24, %v2047_v23  ;;  %v2789_v23 = vld [vmem:[%s4463_s1 + $0x104] sm:$0xf]  ;;  %v2121_v24 = vld [vmem:[%s4463_s1 + $0x118] sm:$0xf0] }
  0x90   : > { %1627 = vmatpush.bf16.msra.mxu1 %v2360_v36  ;;  %1593 = vmatmul.bf16.vlgmr.msrb.gmra.mxu2 %v3377_v27  ;;  %v2240_v36 = vor.u32 %v2822_v28, %v2239_v25  ;;  %v2837_v25 = vld [vmem:[%s4463_s1 + $0x284] sm:$0xf]  ;;  %v2313_v28 = vld [vmem:[%s4463_s1 + $0x298] sm:$0xf0] }
  0x91   : > { %1641 = vmatpush.bf16.msra.mxu2 %v2552_v37  ;;  %1607 = vmatmul.bf16.vlgmr.msrb.gmra.mxu3 %v3379_v32  ;;  %v2432_v37 = vor.u32 %v2870_v30, %v2431_v29  ;;  %v2885_v29 = vld [vmem:[%s4463_s1 + $0x404] sm:$0xf]  ;;  %v2505_v30 = vld [vmem:[%s4463_s1 + $0x418] sm:$0xf0] }
  0x92   : > { %1655 = vmatpush.bf16.msra.mxu3 %v2744_v42  ;;  %v2624_v42 = vor.u32 %v2918_v34, %v2623_v31  ;;  %v2933_v31 = vld [vmem:[%s4463_s1 + $0x584] sm:$0xf]  ;;  %v2697_v34 = vld [vmem:[%s4463_s1 + $0x598] sm:$0xf0] }
  0x93   : > { %1614 = vmatpush.bf16.msra.mxu0 %v2144_v48  ;;  %v2024_v48 = vor.u32 %v2768_v39, %v2023_v38  ;;  %v2783_v38 = vld [vmem:[%s4463_s1 + $0xd4] sm:$0xf]  ;;  %v2097_v39 = vld [vmem:[%s4463_s1 + $0xe8] sm:$0xf0] }
  0x94   : > { %1628 = vmatpush.bf16.msra.mxu1 %v2336_v49  ;;  %v1999_v49 = vld [vmem:[%s4463_s1 + $0x10] sm:$0xf] }
  0x95   : > { %1642 = vmatpush.bf16.msra.mxu2 %v2528_v50  ;;  %v2762_v50 = vld [vmem:[%s4463_s1 + $0x24] sm:$0xf0] }
  0x96   : > { %1656 = vmatpush.bf16.msra.mxu3 %v2720_v54  ;;  %v2810_v54 = vld [vmem:[%s4463_s1 + $0x1a4] sm:$0xf0]  ;;  %v2000_v63 = vor.u32 %v2762_v50, %v1999_v49  ;;  %v2292_v49 = vor.u32 %v2831_v40, %v2289_v43  ;;  %v2484_v50 = vor.u32 %v2879_v44, %v2481_v45  ;;  %v1757_v40 = vld [vmem:[%s4464_s2 + $0x70] sm:$0xff] }
  0x97   : > { %1615 = vmatpush.bf16.msra.mxu0 %v2120_v60  ;;  %v2801_v60 = vld [vmem:[%s4463_s1 + $0x164] sm:$0xf]  ;;  %v2192_v3 = vor.u32 %v2810_v54, %v2191_v53  ;;  %v2676_v54 = vor.u32 %v2927_v46, %v2673_v47  ;;  %v1754_v46 = vld [vmem:[%s4464_s2 + $0x58] sm:$0xff]  ;;  %v1753_v47 = vld [vmem:[%s4464_s2 + $0x50] sm:$0xff] }
  0x98   : > { %1629 = vmatpush.bf16.msra.mxu1 %v2312_v61  ;;  %v2169_v61 = vld [vmem:[%s4463_s1 + $0x178] sm:$0xf0]  ;;  %v2825_v53 = vld [vmem:[%s4463_s1 + $0x224] sm:$0xf] }
  0x99   : > { %1643 = vmatpush.bf16.msra.mxu2 %v2504_v62  ;;  %v2849_v62 = vld [vmem:[%s4463_s1 + $0x2e4] sm:$0xf] }
  0x9a   : > { %1657 = vmatpush.bf16.msra.mxu3 %v2696_v2  ;;  %v2553_v2 = vld [vmem:[%s4463_s1 + $0x478] sm:$0xf0] }
  0x9b   : > { %1616 = vmatpush.bf16.msra.mxu0 %v2096_v8  ;;  %v2172_v8 = vor.u32 %v2801_v60, %v2169_v61  ;;  %v2268_v61 = vor.u32 %v2825_v53, %v2265_v55  ;;  %v1749_v55 = vld [vmem:[%s4464_s2 + $0x30] sm:$0xff] }
  0x9c   : > { %1630 = vmatpush.bf16.msra.mxu1 %v2288_v9  ;;  %v2364_v9 = vor.u32 %v2849_v62, %v2361_v0  ;;  %v2049_v0 = vld [vmem:[%s4463_s1 + $0x88] sm:$0xf0] }
  0x9d   : > { %1644 = vmatpush.bf16.msra.mxu2 %v2480_v10  ;;  %v2556_v10 = vor.u32 %v2897_v1, %v2553_v2  ;;  %v2819_v1 = vld [vmem:[%s4463_s1 + $0x1f4] sm:$0xf]  ;;  %v2652_v2 = vor.u32 %v2921_v58, %v2649_v59 }
  0x9e   : > { %1658 = vmatpush.bf16.msra.mxu3 %v2672_v14  ;;  %v2748_v14 = vor.u32 %v2945_v5, %v2745_v6  ;;  %v2433_v5 = vld [vmem:[%s4463_s1 + $0x388] sm:$0xf0]  ;;  %v2915_v6 = vld [vmem:[%s4463_s1 + $0x4f4] sm:$0xf] }
  0x9f   : > { %1617 = vmatpush.bf16.msra.mxu0 %v2072_v20  ;;  %v2148_v20 = vor.u32 %v2795_v11, %v2145_v12  ;;  %v2765_v11 = vld [vmem:[%s4463_s1 + $0x44] sm:$0xf]  ;;  %v2025_v12 = vld [vmem:[%s4463_s1 + $0x58] sm:$0xf0] }
  0xa0   : > { %1631 = vmatpush.bf16.msra.mxu1 %v2264_v21  ;;  %v2340_v21 = vor.u32 %v2843_v13, %v2337_v15  ;;  %v2813_v13 = vld [vmem:[%s4463_s1 + $0x1c4] sm:$0xf]  ;;  %v2217_v15 = vld [vmem:[%s4463_s1 + $0x1d8] sm:$0xf0] }
  0xa1   : > { %1645 = vmatpush.bf16.msra.mxu2 %v2456_v22  ;;  %v2532_v22 = vor.u32 %v2891_v16, %v2529_v17  ;;  %v2861_v16 = vld [vmem:[%s4463_s1 + $0x344] sm:$0xf]  ;;  %v2409_v17 = vld [vmem:[%s4463_s1 + $0x358] sm:$0xf0] }
  0xa2   : > { %1659 = vmatpush.bf16.msra.mxu3 %v2648_v26  ;;  %v2724_v26 = vor.u32 %v2939_v18, %v2721_v19  ;;  %v2909_v18 = vld [vmem:[%s4463_s1 + $0x4c4] sm:$0xf]  ;;  %v2601_v19 = vld [vmem:[%s4463_s1 + $0x4d8] sm:$0xf0] }
  0xa3   : > { %1618 = vmatpush.bf16.msra.mxu0 %v2048_v35  ;;  %v2124_v35 = vor.u32 %v2789_v23, %v2121_v24  ;;  %v2759_v23 = vld [vmem:[%s4463_s1 + $0x14] sm:$0xf]  ;;  %v2001_v24 = vld [vmem:[%s4463_s1 + $0x28] sm:$0xf0] }
  0xa4   : > { %1632 = vmatpush.bf16.msra.mxu1 %v2240_v36  ;;  %v2316_v36 = vor.u32 %v2837_v25, %v2313_v28  ;;  %v2807_v25 = vld [vmem:[%s4463_s1 + $0x194] sm:$0xf]  ;;  %v2193_v28 = vld [vmem:[%s4463_s1 + $0x1a8] sm:$0xf0] }
  0xa5   : > { %1646 = vmatpush.bf16.msra.mxu2 %v2432_v37  ;;  %v2508_v37 = vor.u32 %v2885_v29, %v2505_v30  ;;  %v2855_v29 = vld [vmem:[%s4463_s1 + $0x314] sm:$0xf]  ;;  %v2385_v30 = vld [vmem:[%s4463_s1 + $0x328] sm:$0xf0] }
  0xa6   : > { %1660 = vmatpush.bf16.msra.mxu3 %v2624_v42  ;;  %v2700_v42 = vor.u32 %v2933_v31, %v2697_v34  ;;  %v2903_v31 = vld [vmem:[%s4463_s1 + $0x494] sm:$0xf]  ;;  %v2577_v34 = vld [vmem:[%s4463_s1 + $0x4a8] sm:$0xf0] }
  0xa7   : > { %1619 = vmatpush.bf16.msra.mxu0 %v2024_v48  ;;  %v2100_v48 = vor.u32 %v2783_v38, %v2097_v39  ;;  %v2580_v38 = vor.u32 %v2903_v31, %v2577_v34  ;;  %v1758_v39 = vld [vmem:[%s4464_s2 + $0x78] sm:$0xff]  ;;  %v1764_v31 = vld [vmem:[%s4464_s2 + $0xa8] sm:$0xff] }
  0xa8   : > { %1633 = vmatpush.bf16.msra.mxu1 %v2216_v51  ;;  %v2777_v51 = vld [vmem:[%s4463_s1 + $0xa4] sm:$0xf] }
  0xa9   : > { %1647 = vmatpush.bf16.msra.mxu2 %v2408_v52  ;;  %v2073_v52 = vld [vmem:[%s4463_s1 + $0xb8] sm:$0xf0] }
  0xaa   : > { %1661 = vmatpush.bf16.msra.mxu3 %v2600_v56  ;;  %v2873_v56 = vld [vmem:[%s4463_s1 + $0x3a4] sm:$0xf]  ;;  %v2076_v60 = vor.u32 %v2777_v51, %v2073_v52 }
  0xab   : > { %1620 = vmatpush.bf16.msra.mxu0 %v2000_v63  ;;  %v2460_v62 = vor.u32 %v2873_v56, %v2457_v57  ;;  %v2771_v63 = vld [vmem:[%s4463_s1 + $0x74] sm:$0xf]  ;;  %v1751_v52 = vld [vmem:[%s4464_s2 + $0x40] sm:$0xff] }
  0xac   : > { %1634 = vmatpush.bf16.msra.mxu1 %v2192_v3  ;;  %v2241_v3 = vld [vmem:[%s4463_s1 + $0x208] sm:$0xf0] }
  0xad   : > { %1648 = vmatpush.bf16.msra.mxu2 %v2384_v4  ;;  %v2867_v4 = vld [vmem:[%s4463_s1 + $0x374] sm:$0xf] }
  0xae   : > { %1662 = vmatpush.bf16.msra.mxu3 %v2576_v7  ;;  %1621 = vmatmul.bf16.vlgmr.msra.gmra.mxu0 %v3381_v33  ;;  %v2625_v7 = vld [vmem:[%s4463_s1 + $0x508] sm:$0xf0] }
  0xaf   : > { %1669 = vmatpush.bf16.msrb.mxu0 %v2172_v8  ;;  %1635 = vmatmul.bf16.vlgmr.msra.gmra.mxu1 %v3392_v41  ;;  %v2052_v8 = vor.u32 %v2771_v63, %v2049_v0  ;;  %v1748_v63 = vld [vmem:[%s4464_s2 + $0x28] sm:$0xff] }
  0xb0   : > { %1683 = vmatpush.bf16.msrb.mxu1 %v2364_v9  ;;  %1649 = vmatmul.bf16.vlgmr.msra.gmra.mxu2 %v3377_v27  ;;  %v2244_v9 = vor.u32 %v2819_v1, %v2241_v3 }
  0xb1   : > { %1697 = vmatpush.bf16.msrb.mxu2 %v2556_v10  ;;  %1663 = vmatmul.bf16.vlgmr.msra.gmra.mxu3 %v3379_v32  ;;  %v2436_v10 = vor.u32 %v2867_v4, %v2433_v5 }
  0xb2   : > { %1711 = vmatpush.bf16.msrb.mxu3 %v2748_v14  ;;  %v2628_v14 = vor.u32 %v2915_v6, %v2625_v7  ;;  %v1746_v6 = vld [vmem:[%s4464_s2 + $0x18] sm:$0xff] }
  0xb3   : > { %1670 = vmatpush.bf16.msrb.mxu0 %v2148_v20  ;;  %v2028_v20 = vor.u32 %v2765_v11, %v2025_v12  ;;  %v4257_v43 = vpop.f32.mrf.mxu1  ;;  %v1744_v12 = vld [vmem:[%s4464_s2 + $0x8] sm:$0xff] }
  0xb4   : > { %1684 = vmatpush.bf16.msrb.mxu1 %v2340_v21  ;;  %v2220_v21 = vor.u32 %v2813_v13, %v2217_v15  ;;  %v1774_v13 = vld [vmem:[%s4464_s2 + $0xf8] sm:$0xff]  ;;  %v1773_v15 = vld [vmem:[%s4464_s2 + $0xf0] sm:$0xff] }
  0xb5   : > { %1698 = vmatpush.bf16.msrb.mxu2 %v2532_v22  ;;  %v2412_v22 = vor.u32 %v2861_v16, %v2409_v17 }
  0xb6   : > { %1712 = vmatpush.bf16.msrb.mxu3 %v2724_v26  ;;  %v2604_v26 = vor.u32 %v2909_v18, %v2601_v19  ;;  %v4259_v44 = vpop.f32.mrf.mxu2 }
  0xb7   : > { %1671 = vmatpush.bf16.msrb.mxu0 %v2124_v35  ;;  %v2004_v35 = vor.u32 %v2759_v23, %v2001_v24  ;;  %v4261_v45 = vpop.f32.mrf.mxu3  ;;  %v1769_v23 = vld [vmem:[%s4464_s2 + $0xd0] sm:$0xff]  ;;  %v1768_v24 = vld [vmem:[%s4464_s2 + $0xc8] sm:$0xff] }
  0xb8   : > { %1685 = vmatpush.bf16.msrb.mxu1 %v2316_v36  ;;  %v2196_v36 = vor.u32 %v2807_v25, %v2193_v28  ;;  %v1767_v25 = vld [vmem:[%s4464_s2 + $0xc0] sm:$0xff] }
  0xb9   : > { %1699 = vmatpush.bf16.msrb.mxu2 %v2508_v37  ;;  %v2388_v37 = vor.u32 %v2855_v29, %v2385_v30  ;;  %v1765_v29 = vld [vmem:[%s4464_s2 + $0xb0] sm:$0xff] }
  0xba   : > { %1713 = vmatpush.bf16.msrb.mxu3 %v2700_v42  ;;  %v4254_v42 = vpop.f32.mrf.mxu0 }
  0xbb   : > { %1672 = vmatpush.bf16.msrb.mxu0 %v2100_v48  ;;  %v1413_v28 = vadd.f32 %v4257_v43, %v4254_v42 }
  0xbc   : > { %1686 = vmatpush.bf16.msrb.mxu1 %v2292_v49 }
  0xbd   : > { %1700 = vmatpush.bf16.msrb.mxu2 %v2484_v50  ;;  %v1752_v50 = vld [vmem:[%s4464_s2 + $0x48] sm:$0xff] }
  0xbe   : > { %1714 = vmatpush.bf16.msrb.mxu3 %v2676_v54  ;;  %v4279_v48 = vpop.f32.mrf.mxu2  ;;  %v1750_v54 = vld [vmem:[%s4464_s2 + $0x38] sm:$0xff] }
  0xbf   : > { %1673 = vmatpush.bf16.msrb.mxu0 %v2076_v60  ;;  %v4281_v49 = vpop.f32.mrf.mxu3 }
  0xc0   : > { %1687 = vmatpush.bf16.msrb.mxu1 %v2268_v61 }
  0xc1   : > { %1701 = vmatpush.bf16.msrb.mxu2 %v2460_v62 }
  0xc2   : > { %1715 = vmatpush.bf16.msrb.mxu3 %v2652_v2  ;;  %v1747_v2 = vld [vmem:[%s4464_s2 + $0x20] sm:$0xff] }
  0xc3   : > { %1674 = vmatpush.bf16.msrb.mxu0 %v2052_v8 }
  0xc4   : > { %1688 = vmatpush.bf16.msrb.mxu1 %v2244_v9 }
  0xc5   : > { %1702 = vmatpush.bf16.msrb.mxu2 %v2436_v10  ;;  %v1745_v10 = vld [vmem:[%s4464_s2 + $0x10] sm:$0xff] }
  0xc6   : > { %1716 = vmatpush.bf16.msrb.mxu3 %v2628_v14  ;;  %v1743_v14 = vld [vmem:[%s4464_s2] sm:$0xff] }
  0xc7   : > { %1675 = vmatpush.bf16.msrb.mxu0 %v2028_v20  ;;  %v1772_v20 = vld [vmem:[%s4464_s2 + $0xe8] sm:$0xff] }
  0xc8   : > { %1689 = vmatpush.bf16.msrb.mxu1 %v2220_v21  ;;  %v1771_v21 = vld [vmem:[%s4464_s2 + $0xe0] sm:$0xff] }
  0xc9   : > { %1703 = vmatpush.bf16.msrb.mxu2 %v2412_v22  ;;  %v1770_v22 = vld [vmem:[%s4464_s2 + $0xd8] sm:$0xff] }
  0xca   : > { %1717 = vmatpush.bf16.msrb.mxu3 %v2604_v26  ;;  %v1766_v26 = vld [vmem:[%s4464_s2 + $0xb8] sm:$0xff] }
  0xcb   : > { %1676 = vmatpush.bf16.msrb.mxu0 %v2004_v35  ;;  %v1427_v35 = vadd.f32 %v4259_v44, %v1413_v28 }
  0xcc   : > { %1690 = vmatpush.bf16.msrb.mxu1 %v2196_v36 }
  0xcd   : > { %1704 = vmatpush.bf16.msrb.mxu2 %v2388_v37  ;;  %v1763_v37 = vld [vmem:[%s4464_s2 + $0xa0] sm:$0xff] }
  0xce   : > { %1718 = vmatpush.bf16.msrb.mxu3 %v2580_v38  ;;  %1677 = vmatmul.bf16.vlgmr.msrb.gmra.mxu0 %v3381_v33  ;;  %v1756_v33 = vld [vmem:[%s4464_s2 + $0x68] sm:$0xff] }
  0xcf   : > { %1791 = vmatpush.msra.mxu0 %v1758_v39  ;;  %1691 = vmatmul.bf16.vlgmr.msrb.gmra.mxu1 %v3392_v41  ;;  %v4266_v41 = vpop.f32.mrf.mxu0 }
  0xd0   : > { %1705 = vmatmul.bf16.vlgmr.msrb.gmra.mxu2 %v3377_v27  ;;  %v1755_v27 = vld [vmem:[%s4464_s2 + $0x60] sm:$0xff]  ;;  %1814 = vmatpush.msra.mxu1 %v1774_v13  ;;  %v1782_v13 = vld [vmem:[%s4464_s2 + $0x138] sm:$0xff] }
  0xd1   : > { %1719 = vmatmul.bf16.vlgmr.msrb.gmra.mxu3 %v3379_v32  ;;  %1792 = vmatpush.msra.mxu0 %v1757_v40  ;;  %v4271_v32 = vpop.f32.mrf.mxu1 }
  0xd2   : > { %2949 = vmatpush.msra.mxu3 %v1758_v39  ;;  %1815 = vmatpush.msra.mxu1 %v1773_v15  ;;  %v1441_v39 = vadd.f32 %v4261_v45, %v1427_v35  ;;  %v1781_v15 = vld [vmem:[%s4464_s2 + $0x130] sm:$0xff] }
  0xd3   : > { %1793 = vmatpush.msra.mxu0 %v1756_v33  ;;  %v4299_v56 = vpop.f32.mrf.mxu2 }
  0xd4   : > { %2950 = vmatpush.msra.mxu3 %v1757_v40  ;;  %v4301_v57 = vpop.f32.mrf.mxu3  ;;  %1816 = vmatpush.msra.mxu1 %v1772_v20  ;;  %v1415_v40 = vadd.f32 %v4271_v32, %v4266_v41  ;;  %v1760_v32 = vld [vmem:[%s4464_s2 + $0x88] sm:$0xff] }
  0xd5   : > { %1794 = vmatpush.msra.mxu0 %v1755_v27 }
  0xd6   : > { %2951 = vmatpush.msra.mxu3 %v1756_v33  ;;  %1817 = vmatpush.msra.mxu1 %v1771_v21  ;;  %v1762_v33 = vld [vmem:[%s4464_s2 + $0x98] sm:$0xff]  ;;  %v1429_v45 = vadd.f32 %v4279_v48, %v1415_v40  ;;  %v1789_v48 = vld [vmem:[%s4464_s2 + $0x170] sm:$0xff] }
  0xd7   : > { %1795 = vmatpush.msra.mxu0 %v1754_v46  ;;  %v4286_v51 = vpop.f32.mrf.mxu0 }
  0xd8   : > { %2952 = vmatpush.msra.mxu3 %v1755_v27  ;;  %1818 = vmatpush.msra.mxu1 %v1770_v22  ;;  %v1778_v22 = vld [vmem:[%s4464_s2 + $0x118] sm:$0xff] }
  0xd9   : > { %1796 = vmatpush.msra.mxu0 %v1753_v47  ;;  %v4291_v53 = vpop.f32.mrf.mxu1 }
  0xda   : > { %2953 = vmatpush.msra.mxu3 %v1754_v46  ;;  %1819 = vmatpush.msra.mxu1 %v1769_v23  ;;  %v1761_v46 = vld [vmem:[%s4464_s2 + $0x90] sm:$0xff] }
  0xdb   : > { %1797 = vmatpush.msra.mxu0 %v1752_v50  ;;  %v4307_v60 = vpop.f32.mrf.mxu2 }
  0xdc   : > { %2954 = vmatpush.msra.mxu3 %v1753_v47  ;;  %v4309_v61 = vpop.f32.mrf.mxu3  ;;  %1820 = vmatpush.msra.mxu1 %v1768_v24 }
  0xdd   : > { %1798 = vmatpush.msra.mxu0 %v1751_v52 }
  0xde   : > { %2955 = vmatpush.msra.mxu3 %v1752_v50  ;;  %1821 = vmatpush.msra.mxu1 %v1767_v25  ;;  %v1725_v50 = vmul.f32 %v1441_v39, %v1441_v39 }
  0xdf   : > { %1799 = vmatpush.msra.mxu0 %v1750_v54  ;;  %v4303_v58 = vpop.f32.mrf.mxu0 }
  0xe0   : > { %2956 = vmatpush.msra.mxu3 %v1751_v52  ;;  %1822 = vmatpush.msra.mxu1 %v1766_v26 }
  0xe1   : > { %1800 = vmatpush.msra.mxu0 %v1749_v55  ;;  %v4305_v59 = vpop.f32.mrf.mxu1 }
  0xe2   : > { %2957 = vmatpush.msra.mxu3 %v1750_v54  ;;  %1823 = vmatpush.msra.mxu1 %v1765_v29  ;;  %v1790_v54 = vld [vmem:[%s4464_s2 + $0x178] sm:$0xff]  ;;  %v1471_v24 = vadd.f32 %v4305_v59, %v4303_v58  ;;  %v1775_v59 = vld [vmem:[%s4464_s2 + $0x100] sm:$0xff] }
  0xe3   : > { %1801 = vmatpush.msra.mxu0 %v1748_v63  ;;  %1837 = vmatpush.msra.mxu2 %v1790_v54 }
  0xe4   : > { %2958 = vmatpush.msra.mxu3 %v1749_v55  ;;  %1824 = vmatpush.msra.mxu1 %v1764_v31  ;;  %v1776_v31 = vld [vmem:[%s4464_s2 + $0x108] sm:$0xff] }
  0xe5   : > { %1802 = vmatpush.msra.mxu0 %v1747_v2  ;;  %1838 = vmatpush.msra.mxu2 %v1789_v48 }
  0xe6   : > { %2959 = vmatpush.msra.mxu3 %v1748_v63  ;;  %1825 = vmatpush.msra.mxu1 %v1763_v37 }
  0xe7   : > { %1803 = vmatpush.msra.mxu0 %v1746_v6 }
  0xe8   : > { %2960 = vmatpush.msra.mxu3 %v1747_v2  ;;  %1826 = vmatpush.msra.mxu1 %v1762_v33 }
  0xe9   : > { %1804 = vmatpush.msra.mxu0 %v1745_v10 }
  0xea   : > { %2961 = vmatpush.msra.mxu3 %v1746_v6  ;;  %1827 = vmatpush.msra.mxu1 %v1761_v46  ;;  %v1786_v6 = vld [vmem:[%s4464_s2 + $0x158] sm:$0xff] }
  0xeb   : > { %v1510_v62 = vpop.f32.mrf.mxu0  ;;  %1805 = vmatpush.msra.mxu0 %v1744_v12 }
  0xec   : > { %v1524_v0 = vpop.f32.mrf.mxu1  ;;  %2962 = vmatpush.msra.mxu3 %v1745_v10  ;;  %1828 = vmatpush.msra.mxu1 %v1760_v32  ;;  %v1785_v10 = vld [vmem:[%s4464_s2 + $0x150] sm:$0xff] }
  0xed   : > { %v1525_v1 = vadd.f32 %v1524_v0, %v1510_v62  ;;  %1806 = vmatpush.msra.mxu0 %v1743_v14  ;;  %v1759_v62 = vld [vmem:[%s4464_s2 + $0x80] sm:$0xff]  ;;  %v1443_v0 = vadd.f32 %v4281_v49, %v1429_v45 }
  0xee   : > { %2963 = vmatpush.msra.mxu3 %v1744_v12  ;;  %1829 = vmatpush.msra.mxu1 %v1759_v62  ;;  %v1783_v12 = vld [vmem:[%s4464_s2 + $0x140] sm:$0xff] }
  0xf0   : > { %2964 = vmatpush.msra.mxu3 %v1743_v14  ;;  %v1469_v14 = vadd.f32 %v4291_v53, %v4286_v51  ;;  %v1779_v51 = vld [vmem:[%s4464_s2 + $0x120] sm:$0xff] }
  0xf2   : > { %v1483_v20 = vadd.f32 %v4299_v56, %v1469_v14  ;;  %v1777_v56 = vld [vmem:[%s4464_s2 + $0x110] sm:$0xff] }
  0xf3   : > { %v1538_v3 = vpop.f32.mrf.mxu2  ;;  %v1512_v8 = vpop.f32.mrf.mxu0 }
  0xf4   : > { %v1539_v4 = vadd.f32 %v1538_v3, %v1525_v1  ;;  %v1552_v5 = vpop.f32.mrf.mxu3  ;;  %v1526_v9 = vpop.f32.mrf.mxu1  ;;  %v1788_v3 = vld [vmem:[%s4464_s2 + $0x168] sm:$0xff]  ;;  %v1497_v23 = vadd.f32 %v4301_v57, %v1483_v20  ;;  %v1485_v57 = vadd.f32 %v4307_v60, %v1471_v24 }
  0xf5   : > { %v1527_v11 = vadd.f32 %v1526_v9, %v1512_v8  ;;  %1839 = vmatpush.msra.mxu2 %v1788_v3  ;;  %v1728_v8 = vmul.f32 %v1443_v0, %v1443_v0 }
  0xf6   : > { %v4320_v7 = vadd.f32 %v1552_v5, %v1539_v4  ;;  %v1787_v5 = vld [vmem:[%s4464_s2 + $0x160] sm:$0xff] }
  0xf7   : > { %1840 = vmatpush.msra.mxu2 %v1787_v5 }
  0xf9   : > { %1841 = vmatpush.msra.mxu2 %v1786_v6 }
  0xfb   : > { %v1540_v16 = vpop.f32.mrf.mxu2  ;;  %1842 = vmatpush.msra.mxu2 %v1785_v10 }
  0xfc   : > { %v1541_v17 = vadd.f32 %v1540_v16, %v1527_v11  ;;  %v1554_v18 = vpop.f32.mrf.mxu3  ;;  %v1784_v11 = vld [vmem:[%s4464_s2 + $0x148] sm:$0xff] }
  0xfd   : > { %1843 = vmatpush.msra.mxu2 %v1784_v11  ;;  %v1780_v16 = vld [vmem:[%s4464_s2 + $0x128] sm:$0xff] }
  0xfe   : > { %v4337_v19 = vadd.f32 %v1554_v18, %v1541_v17 }
  0xff   : > { %1844 = vmatpush.msra.mxu2 %v1783_v12 }
 0x101   : > { %1845 = vmatpush.msra.mxu2 %v1782_v13 }
 0x103   : > { %1846 = vmatpush.msra.mxu2 %v1781_v15 }
 0x105   : > { %1847 = vmatpush.msra.mxu2 %v1780_v16 }
 0x107   : > { %1848 = vmatpush.msra.mxu2 %v1779_v51 }
 0x109   : > { %1849 = vmatpush.msra.mxu2 %v1778_v22 }
 0x10b   : > { %v1566_v30 = vpop.f32.mrf.mxu0  ;;  %1850 = vmatpush.msra.mxu2 %v1777_v56 }
 0x10c   : > { %v1580_v34 = vpop.f32.mrf.mxu1 }
 0x10d   : > { %v1581_v36 = vadd.f32 %v1580_v34, %v1566_v30  ;;  %v1726_v34 = vmul.f32 %v1497_v23, %v1497_v23  ;;  %1851 = vmatpush.msra.mxu2 %v1776_v31 }
 0x10f   : > { %1852 = vmatpush.msra.mxu2 %v1775_v59 }
 0x113   : > { %v1594_v38 = vpop.f32.mrf.mxu2  ;;  %v1568_v27 = vpop.f32.mrf.mxu0 }
 0x114   : > { %v1595_v42 = vadd.f32 %v1594_v38, %v1581_v36  ;;  %v1608_v43 = vpop.f32.mrf.mxu3  ;;  %v1582_v47 = vpop.f32.mrf.mxu1  ;;  %v1499_v38 = vadd.f32 %v4309_v61, %v1485_v57  ;;  %v1727_v61 = vmul.f32 %v4320_v7, %v4320_v7 }
 0x115   : > { %v1583_v41 = vadd.f32 %v1582_v47, %v1568_v27 }
 0x116   : > { %v1609_v44 = vadd.f32 %v1608_v43, %v1595_v42  ;;  %v1729_v43 = vmul.f32 %v1499_v38, %v1499_v38 }
 0x118   : > { %v1731_v52 = vmul.f32 %v1609_v44, %v1609_v44 }
 0x11a   : > { %v1737_v55 = vadd.f32 %v1731_v52, %v1725_v50 }
 0x11b   : > { %v1596_v63 = vpop.f32.mrf.mxu2 }
 0x11c   : > { %v1597_v1 = vadd.f32 %v1596_v63, %v1583_v41  ;;  %1807 = vmatmul.f32.vlgmr.msra.gmra.mxu0 %v1737_v55  ;;  %v1610_v2 = vpop.f32.mrf.mxu3 }
 0x11e   : > { %v1611_v4 = vadd.f32 %v1610_v2, %v1597_v1  ;;  %v1730_v2 = vmul.f32 %v4337_v19, %v4337_v19 }
 0x120   : > { %v1734_v9 = vmul.f32 %v1611_v4, %v1611_v4 }
 0x122   : > { %v1740_v49 = vadd.f32 %v1734_v9, %v1728_v8 }
 0x124   : > { %1810 = vmatmul.f32.vlgmr.msra.gmra.mxu3 %v1740_v49 }
 0x12b   : > { %v1622_v17 = vpop.f32.mrf.mxu0 }
 0x12c   : > { %v1636_v18 = vpop.f32.mrf.mxu1 }
 0x12d   : > { %v1637_v21 = vadd.f32 %v1636_v18, %v1622_v17 }
 0x133   : > { %v1650_v53 = vpop.f32.mrf.mxu2  ;;  %v1624_v29 = vpop.f32.mrf.mxu0 }
 0x134   : > { %v1651_v25 = vadd.f32 %v1650_v53, %v1637_v21  ;;  %v1664_v26 = vpop.f32.mrf.mxu3  ;;  %v1638_v30 = vpop.f32.mrf.mxu1 }
 0x135   : > { %v1639_v58 = vadd.f32 %v1638_v30, %v1624_v29 }
 0x136   : > { %v1665_v28 = vadd.f32 %v1664_v26, %v1651_v25 }
 0x138   : > { %v1732_v35 = vmul.f32 %v1665_v28, %v1665_v28 }
 0x13a   : > { %v1738_v36 = vadd.f32 %v1732_v35, %v1726_v34 }
 0x13b   : > { %v1652_v37 = vpop.f32.mrf.mxu2 }
 0x13c   : > { %v1653_v39 = vadd.f32 %v1652_v37, %v1639_v58  ;;  %1830 = vmatmul.f32.vlgmr.msra.gmra.mxu1 %v1738_v36  ;;  %v1666_v40 = vpop.f32.mrf.mxu3 }
 0x13e   : > { %v1667_v42 = vadd.f32 %v1666_v40, %v1653_v39 }
 0x140   : > { %v1735_v33 = vmul.f32 %v1667_v42, %v1667_v42 }
 0x142   : > { %v1741_v44 = vadd.f32 %v1735_v33, %v1729_v43 }
 0x144   : > { %1833 = vmatmul.f32.gmra.mxu1 %v1741_v44 }
 0x14b   : > { %v1678_v60 = vpop.f32.mrf.mxu0 }
 0x14c   : > { %v1692_v27 = vpop.f32.mrf.mxu1 }
 0x14d   : > { %v1693_v46 = vadd.f32 %v1692_v27, %v1678_v60 }
 0x153   : > { %v1706_v47 = vpop.f32.mrf.mxu2  ;;  %v1680_v41 = vpop.f32.mrf.mxu0 }
 0x154   : > { %v1707_v50 = vadd.f32 %v1706_v47, %v1693_v46  ;;  %v1720_v45 = vpop.f32.mrf.mxu3  ;;  %v1694_v32 = vpop.f32.mrf.mxu1 }
 0x155   : > { %v1695_v62 = vadd.f32 %v1694_v32, %v1680_v41 }
 0x156   : > { %v1721_v52 = vadd.f32 %v1720_v45, %v1707_v50 }
 0x158   : > { %v1733_v54 = vmul.f32 %v1721_v52, %v1721_v52 }
 0x15a   : > { %v1739_v55 = vadd.f32 %v1733_v54, %v1727_v61 }
 0x15b   : > { %v1708_v48 = vpop.f32.mrf.mxu2 }
 0x15c   : > { %v1709_v63 = vadd.f32 %v1708_v48, %v1695_v62  ;;  %1853 = vmatmul.f32.vlgmr.msra.gmra.mxu2 %v1739_v55  ;;  %v1722_v0 = vpop.f32.mrf.mxu3 }
 0x15e   : > { %v1723_v1 = vadd.f32 %v1722_v0, %v1709_v63 }
 0x160   : > { %v1736_v3 = vmul.f32 %v1723_v1, %v1723_v1 }
 0x162   : > { %v1742_v4 = vadd.f32 %v1736_v3, %v1730_v2 }
 0x164   : > { %1856 = vmatmul.f32.gmra.mxu2 %v1742_v4 }
 0x199   : > { %v1808_v5 = vpop.f32.mrf.mxu0 }
 0x19a   : > { %v1809_v8 = vadd.f32 1e-06, %v1808_v5 }
 0x1a7   : > { %v1811_v10 = vpop.f32.mrf.mxu3 }
 0x1a8   : > { %v1812_v12 = vadd.f32 1e-06, %v1811_v10 }
 0x1b9   : > { %v1831_v6 = vpop.f32.mrf.mxu1 }
 0x1ba   : > { %v1832_v9 = vadd.f32 %v1831_v6, %v1809_v8 }
 0x1c1   : > { %v1834_v11 = vpop.f32.mrf.mxu1 }
 0x1c2   : > { %v1835_v13 = vadd.f32 %v1834_v11, %v1812_v12 }
 0x1df   : > { %v1854_v7 = vpop.f32.mrf.mxu2 }
 0x1e0   : > { %v1855_v49 = vadd.f32 %v1854_v7, %v1832_v9 }
 0x1e2   : > { %2989 = vlog2.f32 %v1855_v49 }
 0x1e7   : > { %v1857_v14 = vpop.f32.mrf.mxu2 }
 0x1e8   : > { %v2990_v15 = vpop.eup %2989  ;;  %v1858_v19 = vadd.f32 %v1857_v14, %v1835_v13 }
 0x1e9   : > { %v1861_v16 = vmul.f32 0.6931472, %v2990_v15 }
 0x1ea   : > { %2991 = vlog2.f32 %v1858_v19 }
 0x1eb   : > { %1864 = vst [vmem:[%s211_s9] sm:$0xff] %v1861_v16 }
 0x1f0   : > { %v2992_v17 = vpop.eup %2991 }
 0x1f1   : > { %v1863_v18 = vmul.f32 0.6931472, %v2992_v17 }
 0x1f3   : > { %1865 = vst [vmem:[%s211_s9 + $0x8] sm:$0xff] %v1863_v18 }
 0x1f4 PF: > { %s13_s14 = sadd.s32 1, %s3015_s14   ;;  %s4466_s12 = smov %s3011_s13 }
 0x1f5   : > { %p10_p5 = scmp.ge.s32.totalorder %s13_s14, 4   ;;  %s4467_s13 = smov %s4469_s15 }
 0x1f7   :  { %12 = sbr.rel (!%p10_p5) target bundleno = 2 (0x2), region = 62 }

</bundles_post_ra>
